<compile_context>
chip_gen: v7x
topology: tpu7x:2x2x1
jax: 0.10.0
libtpu: 0.0.40
codegen_flags: <defaults>
</compile_context>

<pallas_src>
import jax
import jax.numpy as jnp
from jax.experimental import pallas as pl
from jax.experimental.pallas import tpu as pltpu


def _rnn_kernel(x2_ref, w_ih0_ref, w_hh0_ref, w_cat_ref, b_ref,
                fc_w_ref, fc_b_ref, out_ref):
    TB, _E = x2_ref.shape
    L = b_ref.shape[0]
    H = w_hh0_ref.shape[0]
    B, _C = out_ref.shape
    T = TB // B

    # Hoisted layer-0 input projection for ALL timesteps (one M=T*B matmul that runs
    # before the recurrence starts). Layer-0 bias (b_ih[0] + b_hh[0]) folded in once.
    x_proj = (jnp.dot(x2_ref[...], w_ih0_ref[...],
                      preferred_element_type=jnp.float32)
              + b_ref[0])                                          # (T*B, H)

    # Biases for layers 1..L-1, broadcast to (B, H) exactly once.
    b_bc = [jnp.broadcast_to(b_ref[l], (B, H)) for l in range(1, L)]

    # (t + l) wavefront over the recurrence, fully unrolled (T and L are tiny and
    # static). Within a diagonal all per-layer matmuls read only OLD state, so they
    # are mutually independent and can be issued back-to-back on the MXU.
    h = [jnp.zeros((B, H), jnp.float32) for _ in range(L)]
    for d in range(T + L - 1):
        pre = [None] * L
        for l in range(L):
            t = d - l
            if 0 <= t < T:
                if l == 0:
                    pre[l] = x_proj[t * B:(t + 1) * B] + jnp.dot(
                        h[0], w_hh0_ref[...],
                        preferred_element_type=jnp.float32)
                else:
                    # Fused [input->hidden ; hidden->hidden] matmul: one K=2H push.
                    cat = jnp.concatenate([h[l - 1], h[l]], axis=1)   # (B, 2H)
                    pre[l] = jnp.dot(
                        cat, w_cat_ref[l - 1],
                        preferred_element_type=jnp.float32) + b_bc[l - 1]
        h = [jnp.tanh(pre[l]) if pre[l] is not None else h[l] for l in range(L)]

    # out[:, -1, :] of the top RNN layer == final hidden state of layer L-1.
    out_ref[...] = (jnp.dot(h[L - 1], fc_w_ref[...],
                            preferred_element_type=jnp.float32)
                    + fc_b_ref[...])                               # (B, C)


def rnn_embedding_forward(ids, params):
    """ids: (B, T) int32 token ids."""
    B, T = ids.shape
    emb = params["emb"]                       # (V, E), row 0 is zeros (padding_idx=0)
    x = emb[ids]                              # (B, T, E) embedding gather (glue)
    x = jnp.transpose(x, (1, 0, 2))           # (T, B, E) time-major
    E = x.shape[-1]
    x2 = x.reshape(T * B, E)                  # (T*B, E)

    L, H = params["w_hh"].shape[0], params["w_hh"].shape[1]
    C = params["fc_w"].shape[0]

    w_ih0_T = params["w_ih0"].T                                   # (E, H)
    w_hh0_T = params["w_hh"][0].T                                 # (H, H)
    # Fused [input->hidden ; hidden->hidden] weights for layers 1..L-1: (L-1, 2H, H)
    w_cat = jnp.concatenate(
        [jnp.transpose(params["w_ihr"], (0, 2, 1)),
         jnp.transpose(params["w_hh"][1:], (0, 2, 1))], axis=1)
    b_sum = (params["b_ih"] + params["b_hh"])[:, None, :]         # (L, 1, H)
    fc_w_T = params["fc_w"].T                                     # (H, C)
    fc_b = params["fc_b"][None, :]                                # (1, C)

    flops = (2 * T * B * E * H                       # hoisted layer-0 projection
             + T * 2 * B * H * H                     # layer-0 recurrence
             + T * (L - 1) * 2 * B * (2 * H) * H     # fused layers 1..L-1
             + 2 * B * H * C)                        # FC head
    transcendentals = T * L * B * H
    bytes_accessed = 4 * (x2.size + w_ih0_T.size + w_hh0_T.size + w_cat.size
                          + b_sum.size + fc_w_T.size + fc_b.size + B * C)
    cost = pl.CostEstimate(flops=flops, transcendentals=transcendentals,
                           bytes_accessed=bytes_accessed)

    # Everything is VMEM-resident at these sizes; no grid needed (B=2, T=8).
    # For larger B on v7x, add a batch grid axis with dimension_semantics=("parallel",).
    vmem = pl.BlockSpec(memory_space=pltpu.MemorySpace.VMEM)
    out = pl.pallas_call(
        _rnn_kernel,
        out_shape=jax.ShapeDtypeStruct((B, C), jnp.float32),
        in_specs=[vmem] * 7,
        out_specs=vmem,
        cost_estimate=cost,
    )(x2, w_ih0_T, w_hh0_T, w_cat, b_sum, fc_w_T, fc_b)
    return out


def init_params(key, vocab_size, embedding_dim, hidden_size, num_layers, num_classes):
    ks = jax.random.split(key, 8)
    scale = 1.0 / jnp.sqrt(hidden_size)
    emb = 0.1 * jax.random.normal(ks[0], (vocab_size, embedding_dim), jnp.float32)
    emb = emb.at[0].set(0.0)  # padding_idx=0
    p = {
        "emb": emb,
        "w_ih0": jax.random.uniform(ks[1], (hidden_size, embedding_dim),
                                    jnp.float32, -scale, scale),
        "w_ihr": jax.random.uniform(ks[2], (num_layers - 1, hidden_size, hidden_size),
                                    jnp.float32, -scale, scale),
        "w_hh": jax.random.uniform(ks[3], (num_layers, hidden_size, hidden_size),
                                   jnp.float32, -scale, scale),
        "b_ih": jax.random.uniform(ks[4], (num_layers, hidden_size),
                                   jnp.float32, -scale, scale),
        "b_hh": jax.random.uniform(ks[5], (num_layers, hidden_size),
                                   jnp.float32, -scale, scale),
        "fc_w": jax.random.uniform(ks[6], (num_classes, hidden_size),
                                   jnp.float32, -scale, scale),
        "fc_b": jax.random.uniform(ks[7], (num_classes,),
                                   jnp.float32, -scale, scale),
    }
    return p


def reference_forward(ids, params):
    """Pure-JAX reference matching nn.Embedding + nn.RNN(batch_first) + Linear."""
    B, T = ids.shape
    L, H = params["w_hh"].shape[0], params["w_hh"].shape[1]
    x = params["emb"][ids]  # (B, T, E)
    h = [jnp.zeros((B, H), jnp.float32) for _ in range(L)]
    for t in range(T):
        inp = x[:, t, :]
        for l in range(L):
            w_in = params["w_ih0"] if l == 0 else params["w_ihr"][l - 1]
            pre = (inp @ w_in.T + h[l] @ params["w_hh"][l].T
                   + params["b_ih"][l] + params["b_hh"][l])
            h[l] = jnp.tanh(pre)
            inp = h[l]
    return h[-1] @ params["fc_w"].T + params["fc_b"]


if __name__ == "__main__":
    VOCAB, E, H, L, C = 50, 25, 128, 3, 3
    B, T = 2, 8

    key = jax.random.PRNGKey(0)
    kp, ki = jax.random.split(key)
    params = init_params(kp, VOCAB, E, H, L, C)
    ids = jax.random.randint(ki, (B, T), 0, VOCAB, dtype=jnp.int32)
    ids = ids.at[0, -2].set(0)  # exercise padding_idx row

    out = jax.block_until_ready(rnn_embedding_forward(ids, params))
    ref = jax.block_until_ready(reference_forward(ids, params))

    assert out.shape == (B, C)
    assert jnp.allclose(out, ref, atol=1e-4, rtol=1e-4), (out, ref)
    print("KERNEL_OK")
</pallas_src>

<mosaic_0001>
module attributes {stable_mosaic.version = 11 : i64} {
  func.func @_rnn_kernel(%arg0: memref<16x25xf32, #tpu.memory_space<vmem>>, %arg1: memref<25x128xf32, #tpu.memory_space<vmem>>, %arg2: memref<128x128xf32, #tpu.memory_space<vmem>>, %arg3: memref<2x256x128xf32, #tpu.memory_space<vmem>>, %arg4: memref<3x1x128xf32, #tpu.memory_space<vmem>>, %arg5: memref<128x3xf32, #tpu.memory_space<vmem>>, %arg6: memref<1x3xf32, #tpu.memory_space<vmem>>, %arg7: memref<2x3xf32, #tpu.memory_space<vmem>>) attributes {dimension_semantics = [], scalar_prefetch = 0 : i64, scratch_operands = 0 : i64, tpu.core_type = #tpu.core_type<tc>} {
    %c0 = arith.constant 0 : index
    %c0_0 = arith.constant 0 : index
    %0 = vector.load %arg0[%c0, %c0_0] : memref<16x25xf32, #tpu.memory_space<vmem>>, vector<16x25xf32>
    %c0_1 = arith.constant 0 : index
    %c0_2 = arith.constant 0 : index
    %1 = vector.load %arg1[%c0_1, %c0_2] : memref<25x128xf32, #tpu.memory_space<vmem>>, vector<25x128xf32>
    %cst = arith.constant dense<0.000000e+00> : vector<16x128xf32>
    %2 = tpu.matmul %0, %1, %cst {dimension_numbers = #tpu.dot_dimension_numbers<[1], [0], [0], [1], [0, 0, 1, 1], [], []>} : vector<16x25xf32>, vector<25x128xf32>, vector<16x128xf32> -> vector<16x128xf32>
    %c0_3 = arith.constant 0 : index
    %c0_4 = arith.constant 0 : index
    %c0_5 = arith.constant 0 : index
    %3 = vector.load %arg4[%c0_3, %c0_4, %c0_5] : memref<3x1x128xf32, #tpu.memory_space<vmem>>, vector<1x1x128xf32>
    %4 = vector.shape_cast %3 : vector<1x1x128xf32> to vector<1x128xf32>
    %5 = vector.broadcast %4 : vector<1x128xf32> to vector<16x128xf32>
    %6 = arith.addf %2, %5 : vector<16x128xf32>
    %c1 = arith.constant 1 : index
    %c0_6 = arith.constant 0 : index
    %c0_7 = arith.constant 0 : index
    %7 = vector.load %arg4[%c1, %c0_6, %c0_7] : memref<3x1x128xf32, #tpu.memory_space<vmem>>, vector<1x1x128xf32>
    %8 = vector.shape_cast %7 : vector<1x1x128xf32> to vector<1x128xf32>
    %9 = vector.shape_cast %8 : vector<1x128xf32> to vector<1x128xf32>
    %10 = vector.broadcast %9 : vector<1x128xf32> to vector<2x128xf32>
    %c2 = arith.constant 2 : index
    %c0_8 = arith.constant 0 : index
    %c0_9 = arith.constant 0 : index
    %11 = vector.load %arg4[%c2, %c0_8, %c0_9] : memref<3x1x128xf32, #tpu.memory_space<vmem>>, vector<1x1x128xf32>
    %12 = vector.shape_cast %11 : vector<1x1x128xf32> to vector<1x128xf32>
    %13 = vector.shape_cast %12 : vector<1x128xf32> to vector<1x128xf32>
    %14 = vector.broadcast %13 : vector<1x128xf32> to vector<2x128xf32>
    %cst_10 = arith.constant 0.000000e+00 : f32
    %15 = vector.broadcast %cst_10 : f32 to vector<2x128xf32>
    %cst_11 = arith.constant 0.000000e+00 : f32
    %16 = vector.broadcast %cst_11 : f32 to vector<2x128xf32>
    %cst_12 = arith.constant 0.000000e+00 : f32
    %17 = vector.broadcast %cst_12 : f32 to vector<2x128xf32>
    %18 = vector.extract_strided_slice %6 {offsets = [0, 0], sizes = [2, 128], strides = [1, 1]} : vector<16x128xf32> to vector<2x128xf32>
    %c0_13 = arith.constant 0 : index
    %c0_14 = arith.constant 0 : index
    %19 = vector.load %arg2[%c0_13, %c0_14] : memref<128x128xf32, #tpu.memory_space<vmem>>, vector<128x128xf32>
    %cst_15 = arith.constant dense<0.000000e+00> : vector<2x128xf32>
    %20 = tpu.matmul %15, %19, %cst_15 {dimension_numbers = #tpu.dot_dimension_numbers<[1], [0], [0], [1], [0, 0, 1, 1], [], []>} : vector<2x128xf32>, vector<128x128xf32>, vector<2x128xf32> -> vector<2x128xf32>
    %21 = arith.addf %18, %20 : vector<2x128xf32>
    %22 = math.tanh %21 : vector<2x128xf32>
    %23 = vector.extract_strided_slice %6 {offsets = [2, 0], sizes = [2, 128], strides = [1, 1]} : vector<16x128xf32> to vector<2x128xf32>
    %c0_16 = arith.constant 0 : index
    %c0_17 = arith.constant 0 : index
    %24 = vector.load %arg2[%c0_16, %c0_17] : memref<128x128xf32, #tpu.memory_space<vmem>>, vector<128x128xf32>
    %cst_18 = arith.constant dense<0.000000e+00> : vector<2x128xf32>
    %25 = tpu.matmul %22, %24, %cst_18 {dimension_numbers = #tpu.dot_dimension_numbers<[1], [0], [0], [1], [0, 0, 1, 1], [], []>} : vector<2x128xf32>, vector<128x128xf32>, vector<2x128xf32> -> vector<2x128xf32>
    %26 = arith.addf %23, %25 : vector<2x128xf32>
    %27 = tpu.concatenate %22, %16 in 1 : vector<2x128xf32>, vector<2x128xf32> -> vector<2x256xf32>
    %c0_19 = arith.constant 0 : index
    %c0_20 = arith.constant 0 : index
    %c0_21 = arith.constant 0 : index
    %28 = vector.load %arg3[%c0_19, %c0_20, %c0_21] : memref<2x256x128xf32, #tpu.memory_space<vmem>>, vector<1x256x128xf32>
    %29 = vector.shape_cast %28 : vector<1x256x128xf32> to vector<256x128xf32>
    %cst_22 = arith.constant dense<0.000000e+00> : vector<2x128xf32>
    %30 = tpu.matmul %27, %29, %cst_22 {dimension_numbers = #tpu.dot_dimension_numbers<[1], [0], [0], [1], [0, 0, 1, 1], [], []>} : vector<2x256xf32>, vector<256x128xf32>, vector<2x128xf32> -> vector<2x128xf32>
    %31 = arith.addf %30, %10 : vector<2x128xf32>
    %32 = math.tanh %26 : vector<2x128xf32>
    %33 = math.tanh %31 : vector<2x128xf32>
    %34 = vector.extract_strided_slice %6 {offsets = [4, 0], sizes = [2, 128], strides = [1, 1]} : vector<16x128xf32> to vector<2x128xf32>
    %c0_23 = arith.constant 0 : index
    %c0_24 = arith.constant 0 : index
    %35 = vector.load %arg2[%c0_23, %c0_24] : memref<128x128xf32, #tpu.memory_space<vmem>>, vector<128x128xf32>
    %cst_25 = arith.constant dense<0.000000e+00> : vector<2x128xf32>
    %36 = tpu.matmul %32, %35, %cst_25 {dimension_numbers = #tpu.dot_dimension_numbers<[1], [0], [0], [1], [0, 0, 1, 1], [], []>} : vector<2x128xf32>, vector<128x128xf32>, vector<2x128xf32> -> vector<2x128xf32>
    %37 = arith.addf %34, %36 : vector<2x128xf32>
    %38 = tpu.concatenate %32, %33 in 1 : vector<2x128xf32>, vector<2x128xf32> -> vector<2x256xf32>
    %c0_26 = arith.constant 0 : index
    %c0_27 = arith.constant 0 : index
    %c0_28 = arith.constant 0 : index
    %39 = vector.load %arg3[%c0_26, %c0_27, %c0_28] : memref<2x256x128xf32, #tpu.memory_space<vmem>>, vector<1x256x128xf32>
    %40 = vector.shape_cast %39 : vector<1x256x128xf32> to vector<256x128xf32>
    %cst_29 = arith.constant dense<0.000000e+00> : vector<2x128xf32>
    %41 = tpu.matmul %38, %40, %cst_29 {dimension_numbers = #tpu.dot_dimension_numbers<[1], [0], [0], [1], [0, 0, 1, 1], [], []>} : vector<2x256xf32>, vector<256x128xf32>, vector<2x128xf32> -> vector<2x128xf32>
    %42 = arith.addf %41, %10 : vector<2x128xf32>
    %43 = tpu.concatenate %33, %17 in 1 : vector<2x128xf32>, vector<2x128xf32> -> vector<2x256xf32>
    %c1_30 = arith.constant 1 : index
    %c0_31 = arith.constant 0 : index
    %c0_32 = arith.constant 0 : index
    %44 = vector.load %arg3[%c1_30, %c0_31, %c0_32] : memref<2x256x128xf32, #tpu.memory_space<vmem>>, vector<1x256x128xf32>
    %45 = vector.shape_cast %44 : vector<1x256x128xf32> to vector<256x128xf32>
    %cst_33 = arith.constant dense<0.000000e+00> : vector<2x128xf32>
    %46 = tpu.matmul %43, %45, %cst_33 {dimension_numbers = #tpu.dot_dimension_numbers<[1], [0], [0], [1], [0, 0, 1, 1], [], []>} : vector<2x256xf32>, vector<256x128xf32>, vector<2x128xf32> -> vector<2x128xf32>
    %47 = arith.addf %46, %14 : vector<2x128xf32>
    %48 = math.tanh %37 : vector<2x128xf32>
    %49 = math.tanh %42 : vector<2x128xf32>
    %50 = math.tanh %47 : vector<2x128xf32>
    %51 = vector.extract_strided_slice %6 {offsets = [6, 0], sizes = [2, 128], strides = [1, 1]} : vector<16x128xf32> to vector<2x128xf32>
    %c0_34 = arith.constant 0 : index
    %c0_35 = arith.constant 0 : index
    %52 = vector.load %arg2[%c0_34, %c0_35] : memref<128x128xf32, #tpu.memory_space<vmem>>, vector<128x128xf32>
    %cst_36 = arith.constant dense<0.000000e+00> : vector<2x128xf32>
    %53 = tpu.matmul %48, %52, %cst_36 {dimension_numbers = #tpu.dot_dimension_numbers<[1], [0], [0], [1], [0, 0, 1, 1], [], []>} : vector<2x128xf32>, vector<128x128xf32>, vector<2x128xf32> -> vector<2x128xf32>
    %54 = arith.addf %51, %53 : vector<2x128xf32>
    %55 = tpu.concatenate %48, %49 in 1 : vector<2x128xf32>, vector<2x128xf32> -> vector<2x256xf32>
    %c0_37 = arith.constant 0 : index
    %c0_38 = arith.constant 0 : index
    %c0_39 = arith.constant 0 : index
    %56 = vector.load %arg3[%c0_37, %c0_38, %c0_39] : memref<2x256x128xf32, #tpu.memory_space<vmem>>, vector<1x256x128xf32>
    %57 = vector.shape_cast %56 : vector<1x256x128xf32> to vector<256x128xf32>
    %cst_40 = arith.constant dense<0.000000e+00> : vector<2x128xf32>
    %58 = tpu.matmul %55, %57, %cst_40 {dimension_numbers = #tpu.dot_dimension_numbers<[1], [0], [0], [1], [0, 0, 1, 1], [], []>} : vector<2x256xf32>, vector<256x128xf32>, vector<2x128xf32> -> vector<2x128xf32>
    %59 = arith.addf %58, %10 : vector<2x128xf32>
    %60 = tpu.concatenate %49, %50 in 1 : vector<2x128xf32>, vector<2x128xf32> -> vector<2x256xf32>
    %c1_41 = arith.constant 1 : index
    %c0_42 = arith.constant 0 : index
    %c0_43 = arith.constant 0 : index
    %61 = vector.load %arg3[%c1_41, %c0_42, %c0_43] : memref<2x256x128xf32, #tpu.memory_space<vmem>>, vector<1x256x128xf32>
    %62 = vector.shape_cast %61 : vector<1x256x128xf32> to vector<256x128xf32>
    %cst_44 = arith.constant dense<0.000000e+00> : vector<2x128xf32>
    %63 = tpu.matmul %60, %62, %cst_44 {dimension_numbers = #tpu.dot_dimension_numbers<[1], [0], [0], [1], [0, 0, 1, 1], [], []>} : vector<2x256xf32>, vector<256x128xf32>, vector<2x128xf32> -> vector<2x128xf32>
    %64 = arith.addf %63, %14 : vector<2x128xf32>
    %65 = math.tanh %54 : vector<2x128xf32>
    %66 = math.tanh %59 : vector<2x128xf32>
    %67 = math.tanh %64 : vector<2x128xf32>
    %68 = vector.extract_strided_slice %6 {offsets = [8, 0], sizes = [2, 128], strides = [1, 1]} : vector<16x128xf32> to vector<2x128xf32>
    %c0_45 = arith.constant 0 : index
    %c0_46 = arith.constant 0 : index
    %69 = vector.load %arg2[%c0_45, %c0_46] : memref<128x128xf32, #tpu.memory_space<vmem>>, vector<128x128xf32>
    %cst_47 = arith.constant dense<0.000000e+00> : vector<2x128xf32>
    %70 = tpu.matmul %65, %69, %cst_47 {dimension_numbers = #tpu.dot_dimension_numbers<[1], [0], [0], [1], [0, 0, 1, 1], [], []>} : vector<2x128xf32>, vector<128x128xf32>, vector<2x128xf32> -> vector<2x128xf32>
    %71 = arith.addf %68, %70 : vector<2x128xf32>
    %72 = tpu.concatenate %65, %66 in 1 : vector<2x128xf32>, vector<2x128xf32> -> vector<2x256xf32>
    %c0_48 = arith.constant 0 : index
    %c0_49 = arith.constant 0 : index
    %c0_50 = arith.constant 0 : index
    %73 = vector.load %arg3[%c0_48, %c0_49, %c0_50] : memref<2x256x128xf32, #tpu.memory_space<vmem>>, vector<1x256x128xf32>
    %74 = vector.shape_cast %73 : vector<1x256x128xf32> to vector<256x128xf32>
    %cst_51 = arith.constant dense<0.000000e+00> : vector<2x128xf32>
    %75 = tpu.matmul %72, %74, %cst_51 {dimension_numbers = #tpu.dot_dimension_numbers<[1], [0], [0], [1], [0, 0, 1, 1], [], []>} : vector<2x256xf32>, vector<256x128xf32>, vector<2x128xf32> -> vector<2x128xf32>
    %76 = arith.addf %75, %10 : vector<2x128xf32>
    %77 = tpu.concatenate %66, %67 in 1 : vector<2x128xf32>, vector<2x128xf32> -> vector<2x256xf32>
    %c1_52 = arith.constant 1 : index
    %c0_53 = arith.constant 0 : index
    %c0_54 = arith.constant 0 : index
    %78 = vector.load %arg3[%c1_52, %c0_53, %c0_54] : memref<2x256x128xf32, #tpu.memory_space<vmem>>, vector<1x256x128xf32>
    %79 = vector.shape_cast %78 : vector<1x256x128xf32> to vector<256x128xf32>
    %cst_55 = arith.constant dense<0.000000e+00> : vector<2x128xf32>
    %80 = tpu.matmul %77, %79, %cst_55 {dimension_numbers = #tpu.dot_dimension_numbers<[1], [0], [0], [1], [0, 0, 1, 1], [], []>} : vector<2x256xf32>, vector<256x128xf32>, vector<2x128xf32> -> vector<2x128xf32>
    %81 = arith.addf %80, %14 : vector<2x128xf32>
    %82 = math.tanh %71 : vector<2x128xf32>
    %83 = math.tanh %76 : vector<2x128xf32>
    %84 = math.tanh %81 : vector<2x128xf32>
    %85 = vector.extract_strided_slice %6 {offsets = [10, 0], sizes = [2, 128], strides = [1, 1]} : vector<16x128xf32> to vector<2x128xf32>
    %c0_56 = arith.constant 0 : index
    %c0_57 = arith.constant 0 : index
    %86 = vector.load %arg2[%c0_56, %c0_57] : memref<128x128xf32, #tpu.memory_space<vmem>>, vector<128x128xf32>
    %cst_58 = arith.constant dense<0.000000e+00> : vector<2x128xf32>
    %87 = tpu.matmul %82, %86, %cst_58 {dimension_numbers = #tpu.dot_dimension_numbers<[1], [0], [0], [1], [0, 0, 1, 1], [], []>} : vector<2x128xf32>, vector<128x128xf32>, vector<2x128xf32> -> vector<2x128xf32>
    %88 = arith.addf %85, %87 : vector<2x128xf32>
    %89 = tpu.concatenate %82, %83 in 1 : vector<2x128xf32>, vector<2x128xf32> -> vector<2x256xf32>
    %c0_59 = arith.constant 0 : index
    %c0_60 = arith.constant 0 : index
    %c0_61 = arith.constant 0 : index
    %90 = vector.load %arg3[%c0_59, %c0_60, %c0_61] : memref<2x256x128xf32, #tpu.memory_space<vmem>>, vector<1x256x128xf32>
    %91 = vector.shape_cast %90 : vector<1x256x128xf32> to vector<256x128xf32>
    %cst_62 = arith.constant dense<0.000000e+00> : vector<2x128xf32>
    %92 = tpu.matmul %89, %91, %cst_62 {dimension_numbers = #tpu.dot_dimension_numbers<[1], [0], [0], [1], [0, 0, 1, 1], [], []>} : vector<2x256xf32>, vector<256x128xf32>, vector<2x128xf32> -> vector<2x128xf32>
    %93 = arith.addf %92, %10 : vector<2x128xf32>
    %94 = tpu.concatenate %83, %84 in 1 : vector<2x128xf32>, vector<2x128xf32> -> vector<2x256xf32>
    %c1_63 = arith.constant 1 : index
    %c0_64 = arith.constant 0 : index
    %c0_65 = arith.constant 0 : index
    %95 = vector.load %arg3[%c1_63, %c0_64, %c0_65] : memref<2x256x128xf32, #tpu.memory_space<vmem>>, vector<1x256x128xf32>
    %96 = vector.shape_cast %95 : vector<1x256x128xf32> to vector<256x128xf32>
    %cst_66 = arith.constant dense<0.000000e+00> : vector<2x128xf32>
    %97 = tpu.matmul %94, %96, %cst_66 {dimension_numbers = #tpu.dot_dimension_numbers<[1], [0], [0], [1], [0, 0, 1, 1], [], []>} : vector<2x256xf32>, vector<256x128xf32>, vector<2x128xf32> -> vector<2x128xf32>
    %98 = arith.addf %97, %14 : vector<2x128xf32>
    %99 = math.tanh %88 : vector<2x128xf32>
    %100 = math.tanh %93 : vector<2x128xf32>
    %101 = math.tanh %98 : vector<2x128xf32>
    %102 = vector.extract_strided_slice %6 {offsets = [12, 0], sizes = [2, 128], strides = [1, 1]} : vector<16x128xf32> to vector<2x128xf32>
    %c0_67 = arith.constant 0 : index
    %c0_68 = arith.constant 0 : index
    %103 = vector.load %arg2[%c0_67, %c0_68] : memref<128x128xf32, #tpu.memory_space<vmem>>, vector<128x128xf32>
    %cst_69 = arith.constant dense<0.000000e+00> : vector<2x128xf32>
    %104 = tpu.matmul %99, %103, %cst_69 {dimension_numbers = #tpu.dot_dimension_numbers<[1], [0], [0], [1], [0, 0, 1, 1], [], []>} : vector<2x128xf32>, vector<128x128xf32>, vector<2x128xf32> -> vector<2x128xf32>
    %105 = arith.addf %102, %104 : vector<2x128xf32>
    %106 = tpu.concatenate %99, %100 in 1 : vector<2x128xf32>, vector<2x128xf32> -> vector<2x256xf32>
    %c0_70 = arith.constant 0 : index
    %c0_71 = arith.constant 0 : index
    %c0_72 = arith.constant 0 : index
    %107 = vector.load %arg3[%c0_70, %c0_71, %c0_72] : memref<2x256x128xf32, #tpu.memory_space<vmem>>, vector<1x256x128xf32>
    %108 = vector.shape_cast %107 : vector<1x256x128xf32> to vector<256x128xf32>
    %cst_73 = arith.constant dense<0.000000e+00> : vector<2x128xf32>
    %109 = tpu.matmul %106, %108, %cst_73 {dimension_numbers = #tpu.dot_dimension_numbers<[1], [0], [0], [1], [0, 0, 1, 1], [], []>} : vector<2x256xf32>, vector<256x128xf32>, vector<2x128xf32> -> vector<2x128xf32>
    %110 = arith.addf %109, %10 : vector<2x128xf32>
    %111 = tpu.concatenate %100, %101 in 1 : vector<2x128xf32>, vector<2x128xf32> -> vector<2x256xf32>
    %c1_74 = arith.constant 1 : index
    %c0_75 = arith.constant 0 : index
    %c0_76 = arith.constant 0 : index
    %112 = vector.load %arg3[%c1_74, %c0_75, %c0_76] : memref<2x256x128xf32, #tpu.memory_space<vmem>>, vector<1x256x128xf32>
    %113 = vector.shape_cast %112 : vector<1x256x128xf32> to vector<256x128xf32>
    %cst_77 = arith.constant dense<0.000000e+00> : vector<2x128xf32>
    %114 = tpu.matmul %111, %113, %cst_77 {dimension_numbers = #tpu.dot_dimension_numbers<[1], [0], [0], [1], [0, 0, 1, 1], [], []>} : vector<2x256xf32>, vector<256x128xf32>, vector<2x128xf32> -> vector<2x128xf32>
    %115 = arith.addf %114, %14 : vector<2x128xf32>
    %116 = math.tanh %105 : vector<2x128xf32>
    %117 = math.tanh %110 : vector<2x128xf32>
    %118 = math.tanh %115 : vector<2x128xf32>
    %119 = vector.extract_strided_slice %6 {offsets = [14, 0], sizes = [2, 128], strides = [1, 1]} : vector<16x128xf32> to vector<2x128xf32>
    %c0_78 = arith.constant 0 : index
    %c0_79 = arith.constant 0 : index
    %120 = vector.load %arg2[%c0_78, %c0_79] : memref<128x128xf32, #tpu.memory_space<vmem>>, vector<128x128xf32>
    %cst_80 = arith.constant dense<0.000000e+00> : vector<2x128xf32>
    %121 = tpu.matmul %116, %120, %cst_80 {dimension_numbers = #tpu.dot_dimension_numbers<[1], [0], [0], [1], [0, 0, 1, 1], [], []>} : vector<2x128xf32>, vector<128x128xf32>, vector<2x128xf32> -> vector<2x128xf32>
    %122 = arith.addf %119, %121 : vector<2x128xf32>
    %123 = tpu.concatenate %116, %117 in 1 : vector<2x128xf32>, vector<2x128xf32> -> vector<2x256xf32>
    %c0_81 = arith.constant 0 : index
    %c0_82 = arith.constant 0 : index
    %c0_83 = arith.constant 0 : index
    %124 = vector.load %arg3[%c0_81, %c0_82, %c0_83] : memref<2x256x128xf32, #tpu.memory_space<vmem>>, vector<1x256x128xf32>
    %125 = vector.shape_cast %124 : vector<1x256x128xf32> to vector<256x128xf32>
    %cst_84 = arith.constant dense<0.000000e+00> : vector<2x128xf32>
    %126 = tpu.matmul %123, %125, %cst_84 {dimension_numbers = #tpu.dot_dimension_numbers<[1], [0], [0], [1], [0, 0, 1, 1], [], []>} : vector<2x256xf32>, vector<256x128xf32>, vector<2x128xf32> -> vector<2x128xf32>
    %127 = arith.addf %126, %10 : vector<2x128xf32>
    %128 = tpu.concatenate %117, %118 in 1 : vector<2x128xf32>, vector<2x128xf32> -> vector<2x256xf32>
    %c1_85 = arith.constant 1 : index
    %c0_86 = arith.constant 0 : index
    %c0_87 = arith.constant 0 : index
    %129 = vector.load %arg3[%c1_85, %c0_86, %c0_87] : memref<2x256x128xf32, #tpu.memory_space<vmem>>, vector<1x256x128xf32>
    %130 = vector.shape_cast %129 : vector<1x256x128xf32> to vector<256x128xf32>
    %cst_88 = arith.constant dense<0.000000e+00> : vector<2x128xf32>
    %131 = tpu.matmul %128, %130, %cst_88 {dimension_numbers = #tpu.dot_dimension_numbers<[1], [0], [0], [1], [0, 0, 1, 1], [], []>} : vector<2x256xf32>, vector<256x128xf32>, vector<2x128xf32> -> vector<2x128xf32>
    %132 = arith.addf %131, %14 : vector<2x128xf32>
    %133 = math.tanh %122 : vector<2x128xf32>
    %134 = math.tanh %127 : vector<2x128xf32>
    %135 = math.tanh %132 : vector<2x128xf32>
    %136 = tpu.concatenate %133, %134 in 1 : vector<2x128xf32>, vector<2x128xf32> -> vector<2x256xf32>
    %c0_89 = arith.constant 0 : index
    %c0_90 = arith.constant 0 : index
    %c0_91 = arith.constant 0 : index
    %137 = vector.load %arg3[%c0_89, %c0_90, %c0_91] : memref<2x256x128xf32, #tpu.memory_space<vmem>>, vector<1x256x128xf32>
    %138 = vector.shape_cast %137 : vector<1x256x128xf32> to vector<256x128xf32>
    %cst_92 = arith.constant dense<0.000000e+00> : vector<2x128xf32>
    %139 = tpu.matmul %136, %138, %cst_92 {dimension_numbers = #tpu.dot_dimension_numbers<[1], [0], [0], [1], [0, 0, 1, 1], [], []>} : vector<2x256xf32>, vector<256x128xf32>, vector<2x128xf32> -> vector<2x128xf32>
    %140 = arith.addf %139, %10 : vector<2x128xf32>
    %141 = tpu.concatenate %134, %135 in 1 : vector<2x128xf32>, vector<2x128xf32> -> vector<2x256xf32>
    %c1_93 = arith.constant 1 : index
    %c0_94 = arith.constant 0 : index
    %c0_95 = arith.constant 0 : index
    %142 = vector.load %arg3[%c1_93, %c0_94, %c0_95] : memref<2x256x128xf32, #tpu.memory_space<vmem>>, vector<1x256x128xf32>
    %143 = vector.shape_cast %142 : vector<1x256x128xf32> to vector<256x128xf32>
    %cst_96 = arith.constant dense<0.000000e+00> : vector<2x128xf32>
    %144 = tpu.matmul %141, %143, %cst_96 {dimension_numbers = #tpu.dot_dimension_numbers<[1], [0], [0], [1], [0, 0, 1, 1], [], []>} : vector<2x256xf32>, vector<256x128xf32>, vector<2x128xf32> -> vector<2x128xf32>
    %145 = arith.addf %144, %14 : vector<2x128xf32>
    %146 = math.tanh %140 : vector<2x128xf32>
    %147 = math.tanh %145 : vector<2x128xf32>
    %148 = tpu.concatenate %146, %147 in 1 : vector<2x128xf32>, vector<2x128xf32> -> vector<2x256xf32>
    %c1_97 = arith.constant 1 : index
    %c0_98 = arith.constant 0 : index
    %c0_99 = arith.constant 0 : index
    %149 = vector.load %arg3[%c1_97, %c0_98, %c0_99] : memref<2x256x128xf32, #tpu.memory_space<vmem>>, vector<1x256x128xf32>
    %150 = vector.shape_cast %149 : vector<1x256x128xf32> to vector<256x128xf32>
    %cst_100 = arith.constant dense<0.000000e+00> : vector<2x128xf32>
    %151 = tpu.matmul %148, %150, %cst_100 {dimension_numbers = #tpu.dot_dimension_numbers<[1], [0], [0], [1], [0, 0, 1, 1], [], []>} : vector<2x256xf32>, vector<256x128xf32>, vector<2x128xf32> -> vector<2x128xf32>
    %152 = arith.addf %151, %14 : vector<2x128xf32>
    %153 = math.tanh %152 : vector<2x128xf32>
    %c0_101 = arith.constant 0 : index
    %c0_102 = arith.constant 0 : index
    %154 = vector.load %arg5[%c0_101, %c0_102] : memref<128x3xf32, #tpu.memory_space<vmem>>, vector<128x3xf32>
    %cst_103 = arith.constant dense<0.000000e+00> : vector<2x3xf32>
    %155 = tpu.matmul %153, %154, %cst_103 {dimension_numbers = #tpu.dot_dimension_numbers<[1], [0], [0], [1], [0, 0, 1, 1], [], []>} : vector<2x128xf32>, vector<128x3xf32>, vector<2x3xf32> -> vector<2x3xf32>
    %c0_104 = arith.constant 0 : index
    %c0_105 = arith.constant 0 : index
    %156 = vector.load %arg6[%c0_104, %c0_105] : memref<1x3xf32, #tpu.memory_space<vmem>>, vector<1x3xf32>
    %157 = vector.broadcast %156 : vector<1x3xf32> to vector<2x3xf32>
    %158 = arith.addf %155, %157 : vector<2x3xf32>
    %c0_106 = arith.constant 0 : index
    %c0_107 = arith.constant 0 : index
    %159 = vector.load %arg7[%c0_106, %c0_107] : memref<2x3xf32, #tpu.memory_space<vmem>>, vector<2x3xf32>
    tpu.vector_store %arg7[%c0_106, %c0_107], %158 {strides = array<i32>} : memref<2x3xf32, #tpu.memory_space<vmem>>, vector<2x3xf32>,
    return
  }
}

</mosaic_0001>

<bundles_post_ra>
// kernel: tpu_custom_call.1
= control target key start
LH: loop header
LB: loop body
LE: loop exit
PB: predicated region body
PF: predicated region fallthrough
CT: control target
= control target key end

     0   :  { %12 = vsyncpa [#allocation3], 0  ;;  %s4853_s0 = inlined_call_operand.hbm [shape: f32[16,25], index: 0, kind: input, shape index: {}]   ;;  %s4854_s1 = inlined_call_operand.hbm [shape: f32[25,128], index: 1, kind: input, shape index: {}]   ;;  %s4855_s2 = inlined_call_operand.vmem [shape: f32[128,128], index: 2, kind: input, shape index: {}]   ;;  %s4856_s3 = inlined_call_operand.hbm [shape: f32[2,256,128], index: 3, kind: input, shape index: {}]   ;;  %s4857_s4 = inlined_call_operand.vmem [shape: f32[3,1,128], index: 4, kind: input, shape index: {}]   ;;  %s4858_s5 = inlined_call_operand.vmem [shape: f32[128,3], index: 5, kind: input, shape index: {}]   ;;  %s4859_s6 = inlined_call_operand.vmem [shape: f32[1,3], index: 6, kind: input, shape index: {}]   ;;  %s4860_s7 = inlined_call_operand.hbm [shape: f32[2,3], index: 7, kind: output, shape index: {}]  }
   0x1   :  { %13 = vsyncpa [#allocation6], 0 }
   0x2   :  { %14 = vsyncpa [#allocation4], 0  ;;  %s4098_s24 = smov [#allocation5]   ;;  %s4099_s26 = smov [#allocation2]  }
   0x3   :  { %s32_s25 = sshll.u32 %s4098_s24, 4  ;;  %s20_s27 = sshll.u32 %s4099_s26, 4  ;;  %s33_s25 = int_to_ptr.vmem [resolvable:$true] %s32_s25  ;;  %s4148_s27 = int_to_ptr.vmem [resolvable:$true] %s20_s27 }
   0x4   :  { %s4004_s30 = scalar_lea.hbm %s4854_s1, 512 }
   0x5   :  { %p4005_p0 = scmp.ne.s32.totalorder %s4854_s1, %s4004_s30  ;;  %p4008_p1 = scmp.lt.u32.totalorder %s4004_s30, %s4854_s1 }
   0x7   :  { %p4010_p2 = pnand %p4008_p1, %p4005_p0 }
   0x9   :  { %4013 = shalt.err (!%p4010_p2)
}
   0xa   :  { %s4014_s12 = scalar_lea.vmem %s33_s25, 512  ;;  %p4019_p4 = scmp.lt.s32.totalorder %s33_s25, %s33_s25 }
   0xb   :  { %p4015_p3 = scmp.ne.s32.totalorder %s33_s25, %s4014_s12  ;;  %p4020_p5 = scmp.lt.s32.totalorder %s4014_s12, %s4014_s12 }
   0xd   :  { %p4021_p6 = por %p4020_p5, %p4019_p4 }
   0xf   :  { %p4022_p7 = pnand %p4021_p6, %p4015_p3 }
  0x11   :  { %4025 = shalt.err (!%p4022_p7)
}
  0x12   :  { %s4100_s13 = smov 128   ;;  %s4101_s14 = smov 8  }
  0x13   :  { %38 = dma.hbm_to_vmem [thread:$0]  %s4854_s1, 512, %s33_s25, [#allocation6], %s4100_s13, %s4100_s13, %s4101_s14  }
  0x14   :  { %s4026_s19 = scalar_lea.hbm %s4853_s0, 256 }
  0x15   :  { %p4027_p8 = scmp.ne.s32.totalorder %s4853_s0, %s4026_s19  ;;  %p4030_p9 = scmp.lt.u32.totalorder %s4026_s19, %s4853_s0 }
  0x17   :  { %p4032_p10 = pnand %p4030_p9, %p4027_p8 }
  0x19   :  { %4035 = shalt.err (!%p4032_p10)
}
  0x1a   :  { %s4036_s24 = scalar_lea.vmem %s4148_s27, 256  ;;  %p4041_p12 = scmp.lt.s32.totalorder %s4148_s27, %s4148_s27 }
  0x1b   :  { %p4037_p11 = scmp.ne.s32.totalorder %s4148_s27, %s4036_s24  ;;  %p4042_p13 = scmp.lt.s32.totalorder %s4036_s24, %s4036_s24 }
  0x1d   :  { %p4043_p0 = por %p4042_p13, %p4041_p12 }
  0x1f   :  { %p4044_p1 = pnand %p4043_p0, %p4037_p11 }
  0x21   :  { %4047 = shalt.err (!%p4044_p1)
}
  0x22   :  { %26 = dma.hbm_to_vmem [thread:$0]  %s4853_s0, 256, %s4148_s27, [#allocation3], %s4100_s13, %s4100_s13, %s4101_s14  }
  0x23   :  { %s4102_s26 = smov [#allocation7]   ;;  %s4048_s8 = scalar_lea.hbm %s4856_s3, 8192 }
  0x24   :  { %s46_s28 = sshll.u32 %s4102_s26, 4  ;;  %p4049_p2 = scmp.ne.s32.totalorder %s4856_s3, %s4048_s8  ;;  %s47_s28 = int_to_ptr.vmem [resolvable:$true] %s46_s28 }
  0x25   :  { %p4052_p3 = scmp.lt.u32.totalorder %s4048_s8, %s4856_s3 }
  0x27   :  { %p4054_p4 = pnand %p4052_p3, %p4049_p2 }
  0x29   :  { %4057 = shalt.err (!%p4054_p4)
}
  0x2a   :  { %s4058_s15 = scalar_lea.vmem %s47_s28, 8192  ;;  %p4063_p6 = scmp.lt.s32.totalorder %s47_s28, %s47_s28 }
  0x2b   :  { %p4059_p5 = scmp.ne.s32.totalorder %s47_s28, %s4058_s15  ;;  %p4064_p7 = scmp.lt.s32.totalorder %s4058_s15, %s4058_s15 }
  0x2d   :  { %p4065_p8 = por %p4064_p7, %p4063_p6 }
  0x2f   :  { %p4066_p9 = pnand %p4065_p8, %p4059_p5 }
  0x31   :  { %4069 = shalt.err (!%p4066_p9)
}
  0x32   :  { %52 = dma.hbm_to_vmem [thread:$0]  %s4856_s3, 8192, %s47_s28, [#allocation6], %s4100_s13, %s4100_s13, %s4101_s14  }
  0x33   :  { %4092 = dma.done.wait [#allocation3], 256  }
  0x34   :  { %4093 = vsyncadd [#allocation3], 4294967040 }
  0x35   :  { %4094 = dma.done.wait [#allocation6], 8704  }
  0x36   :  { %4095 = vsyncadd [#allocation6], 4294958592  ;;  %v4103_v0 = vmov 0.0|0.0   ;;  %vm4104_vm0 = vmmov 0   ;;  %v4105_v1 = vmov 0.0   ;;  %v183_v2 = vld [vmem:[%s4855_s2] sm:$0xff] }
  0x37   :  { %3217 = vmatprep.subr.bf16.mxu1 %v4103_v0  ;;  %2924 = vmatprep.mubr.msk.f32.mxu1 %vm4104_vm0, %v4105_v1  ;;  %v184_v3 = vld [vmem:[%s4855_s2 + $0x8] sm:$0xff]  ;;  %v185_v4 = vld [vmem:[%s4855_s2 + $0x10] sm:$0xff]  ;;  %v186_v6 = vld [vmem:[%s4855_s2 + $0x18] sm:$0xff]  ;;  %vm88_vm1 = vcmask 1040384   ;;  %vm4106_vm2 = vmmov 1   ;;  %vm81_vm4 = vcmask 203776  }
  0x38   :  { %v4212_v5 = vpack.c.bf16 %v184_v3, %v183_v2  ;;  %v4218_v7 = vpack.c.bf16 %v186_v6, %v185_v4  ;;  %v70_v8 = vld [vmem:[#allocation5] sm:$0xff]  ;;  %v71_v9 = vld [vmem:[#allocation5 + $0x8] sm:$0xff]  ;;  %v187_v10 = vld [vmem:[%s4855_s2 + $0x20] sm:$0xff]  ;;  %s4107_s9 = smov [#allocation8]   ;;  %vm2129_vm5 = vcmask 17408  }
  0x39   :  { %v188_v11 = vld [vmem:[%s4855_s2 + $0x28] sm:$0xff]  ;;  %v3207_v12 = vpack.c.bf16 %v71_v9, %v70_v8  ;;  %v72_v13 = vld [vmem:[#allocation5 + $0x10] sm:$0xff]  ;;  %vm3212_vm3 = vmpackc.low %vm88_vm1, %vm4106_vm2  ;;  %s2137_s10 = sshll.u32 %s4107_s9, 4  ;;  %s2138_s10 = int_to_ptr.vmem [resolvable:$true] %s2137_s10 }
  0x3a   :  { %3219 = vmatpush3.bf16.msra.mxu1 %v4212_v5  ;;  %v73_v14 = vld [vmem:[#allocation5 + $0x18] sm:$0x1]  ;;  %v68_v16 = vld [vmem:[#allocation2] sm:$0xff]  ;;  %v4228_v17 = vpack.c.bf16 %v188_v11, %v187_v10  ;;  %v189_v18 = vld [vmem:[%s4855_s2 + $0x30] sm:$0xff]  ;;  %p4075_p11 = scmp.lt.s32.totalorder %s2138_s10, %s2138_s10 }
  0x3b   :  { %3220 = vmatprep.subr.bf16.mxu1 %v4103_v0  ;;  %3208 = vmatprep.subr.bf16.mxu0 %v3207_v12  ;;  %v3211_v15 = vpack.c.bf16 %v73_v14, %v72_v13  ;;  %v190_v19 = vld [vmem:[%s4855_s2 + $0x38] sm:$0xff]  ;;  %v69_v21 = vld [vmem:[#allocation2 + $0x8] sm:$0xff]  ;;  %v191_v22 = vld [vmem:[%s4855_s2 + $0x40] sm:$0xff] }
  0x3c   :  { %3210 = vmatpush3.bf16.msra.mxu0 %v3207_v12  ;;  %2889 = vmatprep.mubr.msk.f32.mxu0 %vm81_vm4, %v68_v16  ;;  %v4239_v20 = vpack.c.bf16 %v190_v19, %v189_v18  ;;  %v192_v23 = vld [vmem:[%s4855_s2 + $0x48] sm:$0xff]  ;;  %v193_v25 = vld [vmem:[%s4855_s2 + $0x50] sm:$0xff]  ;;  %v194_v26 = vld [vmem:[%s4855_s2 + $0x58] sm:$0xff] }
  0x3d   :  { %3213 = vmatprep.subr.msk.bf16.mxu0 %vm3212_vm3, %v3211_v15  ;;  %v4251_v24 = vpack.c.bf16 %v192_v23, %v191_v22  ;;  %v4265_v27 = vpack.c.bf16 %v194_v26, %v193_v25  ;;  %v195_v28 = vld [vmem:[%s4855_s2 + $0x60] sm:$0xff]  ;;  %v196_v29 = vld [vmem:[%s4855_s2 + $0x68] sm:$0xff]  ;;  %v197_v31 = vld [vmem:[%s4855_s2 + $0x70] sm:$0xff] }
  0x3e   :  { %3222 = vmatpush3.bf16.msra.mxu1 %v4218_v7  ;;  %v4277_v30 = vpack.c.bf16 %v196_v29, %v195_v28  ;;  %v198_v32 = vld [vmem:[%s4855_s2 + $0x78] sm:$0xff]  ;;  %v361_v33 = vld [vmem:[#allocation7 + $0x80] sm:$0xff]  ;;  %v363_v39 = vld [vmem:[#allocation7 + $0x90] sm:$0xff] }
  0x3f   :  { %3223 = vmatprep.subr.bf16.mxu1 %v4103_v0  ;;  %v362_v34 = vld [vmem:[#allocation7 + $0x88] sm:$0xff]  ;;  %v4289_v35 = vpack.c.bf16 %v198_v32, %v197_v31  ;;  %v345_v37 = vld [vmem:[#allocation7] sm:$0xff]  ;;  %v364_v40 = vld [vmem:[#allocation7 + $0x98] sm:$0xff] }
  0x40   :  { %3216 = vmatpush3.bf16.msk.msra.mxu0 %vm3212_vm3, %v3211_v15  ;;  %v4293_v36 = vpack.c.bf16 %v362_v34, %v361_v33  ;;  %v346_v38 = vld [vmem:[#allocation7 + $0x8] sm:$0xff]  ;;  %v4301_v42 = vpack.c.bf16 %v364_v40, %v363_v39  ;;  %v347_v43 = vld [vmem:[#allocation7 + $0x10] sm:$0xff]  ;;  %v348_v44 = vld [vmem:[#allocation7 + $0x18] sm:$0xff] }
  0x41   :  { %3241 = vmatprep.subr.bf16.mxu0 %v4103_v0  ;;  %v4297_v41 = vpack.c.bf16 %v346_v38, %v345_v37  ;;  %v365_v45 = vld [vmem:[#allocation7 + $0xa0] sm:$0xff]  ;;  %v366_v46 = vld [vmem:[#allocation7 + $0xa8] sm:$0xff]  ;;  %v4306_v47 = vpack.c.bf16 %v348_v44, %v347_v43  ;;  %v367_v51 = vld [vmem:[#allocation7 + $0xb0] sm:$0xff] }
  0x42   :  { %3225 = vmatpush3.bf16.msra.mxu1 %v4228_v17  ;;  %v4310_v48 = vpack.c.bf16 %v366_v46, %v365_v45  ;;  %v349_v49 = vld [vmem:[#allocation7 + $0x20] sm:$0xff]  ;;  %v350_v50 = vld [vmem:[#allocation7 + $0x28] sm:$0xff]  ;;  %v368_v52 = vld [vmem:[#allocation7 + $0xb8] sm:$0xff] }
  0x43   :  { %3226 = vmatprep.subr.bf16.mxu1 %v4103_v0  ;;  %2890 = vmatmul.mubr.msk.f32.vlgmr.msra.gmra.mrb[0].mxu0 %vm81_vm4, %v69_v21  ;;  %v4315_v53 = vpack.c.bf16 %v350_v50, %v349_v49  ;;  %v4319_v54 = vpack.c.bf16 %v368_v52, %v367_v51  ;;  %v351_v55 = vld [vmem:[#allocation7 + $0x30] sm:$0xff]  ;;  %v352_v56 = vld [vmem:[#allocation7 + $0x38] sm:$0xff]  ;;  %v369_v58 = vld [vmem:[#allocation7 + $0xc0] sm:$0xff] }
  0x44   :  { %3243 = vmatpush3.bf16.msra.mxu0 %v4212_v5  ;;  %2959 = vmatprep.mubr.msk.f32.mxu0 %vm4104_vm0, %v4105_v1  ;;  %v4323_v57 = vpack.c.bf16 %v352_v56, %v351_v55  ;;  %v370_v59 = vld [vmem:[#allocation7 + $0xc8] sm:$0xff]  ;;  %v353_v60 = vld [vmem:[#allocation7 + $0x40] sm:$0xff]  ;;  %v371_v2 = vld [vmem:[#allocation7 + $0xd0] sm:$0xff] }
  0x45   :  { %3244 = vmatprep.subr.bf16.mxu0 %v4103_v0  ;;  %v4329_v61 = vpack.c.bf16 %v370_v59, %v369_v58  ;;  %v354_v62 = vld [vmem:[#allocation7 + $0x48] sm:$0xff]  ;;  %v372_v3 = vld [vmem:[#allocation7 + $0xd8] sm:$0xff]  ;;  %v355_v6 = vld [vmem:[#allocation7 + $0x50] sm:$0xff] }
  0x46   :  { %3228 = vmatpush3.bf16.msra.mxu1 %v4239_v20  ;;  %v4331_v63 = vpack.c.bf16 %v354_v62, %v353_v60  ;;  %v4335_v4 = vpack.c.bf16 %v372_v3, %v371_v2  ;;  %v356_v8 = vld [vmem:[#allocation7 + $0x58] sm:$0xff]  ;;  %v373_v10 = vld [vmem:[#allocation7 + $0xe0] sm:$0xff]  ;;  %v374_v11 = vld [vmem:[#allocation7 + $0xe8] sm:$0xff] }
  0x47   :  { %3229 = vmatprep.subr.bf16.mxu1 %v4103_v0  ;;  %v4337_v9 = vpack.c.bf16 %v356_v8, %v355_v6  ;;  %v357_v12 = vld [vmem:[#allocation7 + $0x60] sm:$0xff]  ;;  %v4341_v13 = vpack.c.bf16 %v374_v11, %v373_v10  ;;  %v358_v14 = vld [vmem:[#allocation7 + $0x68] sm:$0xff]  ;;  %v375_v15 = vld [vmem:[#allocation7 + $0xf0] sm:$0xff] }
  0x48   :  { %3246 = vmatpush3.bf16.msra.mxu0 %v4218_v7  ;;  %v376_v16 = vld [vmem:[#allocation7 + $0xf8] sm:$0xff]  ;;  %v4343_v18 = vpack.c.bf16 %v358_v14, %v357_v12  ;;  %v359_v21 = vld [vmem:[#allocation7 + $0x70] sm:$0xff]  ;;  %v617_v38 = vld [vmem:[#allocation7 + $0x180] sm:$0xff] }
  0x49   :  { %3247 = vmatprep.subr.bf16.mxu0 %v4103_v0  ;;  %v4345_v19 = vpack.c.bf16 %v376_v16, %v375_v15  ;;  %v360_v22 = vld [vmem:[#allocation7 + $0x78] sm:$0xff]  ;;  %v2147_v25 = vld [vmem:[%s4857_s4] ss:$0 sm:$0xff]  ;;  %v618_v39 = vld [vmem:[#allocation7 + $0x188] sm:$0xff] }
  0x4a   :  { %3231 = vmatpush3.bf16.msra.mxu1 %v4251_v24  ;;  %v4349_v23 = vpack.c.bf16 %v360_v22, %v359_v21  ;;  %v4395_v40 = vpack.c.bf16 %v618_v39, %v617_v38  ;;  %v4401_v49 = vld [vmem:[%s4857_s4 + $0x1] ss:$0 sm:$0xff]  ;;  %v601_v56 = vld [vmem:[#allocation7 + $0x100] sm:$0xff]  ;;  %v602_v58 = vld [vmem:[#allocation7 + $0x108] sm:$0xff] }
  0x4b   :  { %3232 = vmatprep.subr.bf16.mxu1 %v4103_v0  ;;  %v619_v59 = vld [vmem:[#allocation7 + $0x190] sm:$0xff]  ;;  %v620_v60 = vld [vmem:[#allocation7 + $0x198] sm:$0xff]  ;;  %v4405_v2 = vpack.c.bf16 %v602_v58, %v601_v56  ;;  %v621_v12 = vld [vmem:[#allocation7 + $0x1a0] sm:$0xff] }
  0x4c   :  { %3249 = vmatpush3.bf16.msra.mxu0 %v4228_v17  ;;  %v4409_v8 = vpack.c.bf16 %v620_v60, %v619_v59  ;;  %v603_v10 = vld [vmem:[#allocation7 + $0x110] sm:$0xff]  ;;  %v604_v11 = vld [vmem:[#allocation7 + $0x118] sm:$0xff]  ;;  %v622_v14 = vld [vmem:[#allocation7 + $0x1a8] sm:$0xff] }
  0x4d   :  { %3250 = vmatprep.subr.bf16.mxu0 %v4103_v0  ;;  %v4413_v15 = vpack.c.bf16 %v604_v11, %v603_v10  ;;  %v4417_v16 = vpack.c.bf16 %v622_v14, %v621_v12  ;;  %v605_v21 = vld [vmem:[#allocation7 + $0x120] sm:$0xff]  ;;  %v606_v22 = vld [vmem:[#allocation7 + $0x128] sm:$0xff]  ;;  %v612_v56 = vld [vmem:[#allocation7 + $0x158] sm:$0xff] }
  0x4e   :  { %3234 = vmatpush3.bf16.msra.mxu1 %v4265_v27  ;;  %v626_v38 = vld [vmem:[#allocation7 + $0x1c8] sm:$0xff]  ;;  %v629_v58 = vld [vmem:[#allocation7 + $0x1e0] sm:$0xff]  ;;  %v631_v11 = vld [vmem:[#allocation7 + $0x1f0] sm:$0xff] }
  0x4f   :  { %3235 = vmatprep.subr.bf16.mxu1 %v4103_v0  ;;  %v630_v59 = vld [vmem:[#allocation7 + $0x1e8] sm:$0xff]  ;;  %v632_v12 = vld [vmem:[#allocation7 + $0x1f8] sm:$0xff] }
  0x50   :  { %3252 = vmatpush3.bf16.msra.mxu0 %v4239_v20  ;;  %v614_v10 = vld [vmem:[#allocation7 + $0x168] sm:$0xff] }
  0x51   :  { %3253 = vmatprep.subr.bf16.mxu0 %v4103_v0 }
  0x52   :  { %3237 = vmatpush3.bf16.msra.mxu1 %v4277_v30 }
  0x53   :  { %3238 = vmatprep.subr.bf16.mxu1 %v4103_v0 }
  0x54   :  { %3255 = vmatpush3.bf16.msra.mxu0 %v4251_v24 }
  0x55   :  { %3256 = vmatprep.subr.bf16.mxu0 %v4103_v0 }
  0x56   :  { %3240 = vmatpush3.bf16.msra.mxu1 %v4289_v35 }
  0x57   :  { %3266 = vmatprep.subr.bf16.mxu1 %v4293_v36 }
  0x58   :  { %3258 = vmatpush3.bf16.msra.mxu0 %v4265_v27 }
  0x59   :  { %2925 = vmatmul.mubr.f32.vlgmr.msra.gmra.mrb[0].mxu1 %v4105_v1  ;;  %3259 = vmatprep.subr.bf16.mxu0 %v4103_v0 }
  0x5a   :  { %3268 = vmatpush3.bf16.msra.mxu1 %v4297_v41  ;;  %441 = vmatprep.mubr.f32.mxu1 %v4105_v1 }
  0x5b   :  { %3270 = vmatprep.subr.bf16.mxu1 %v4301_v42 }
  0x5c   :  { %3261 = vmatpush3.bf16.msra.mxu0 %v4277_v30 }
  0x5d   :  { %3262 = vmatprep.subr.bf16.mxu0 %v4103_v0 }
  0x5e   :  { %3272 = vmatpush3.bf16.msra.mxu1 %v4306_v47 }
  0x5f   :  { %3274 = vmatprep.subr.bf16.mxu1 %v4310_v48 }
  0x60   :  { %3264 = vmatpush3.bf16.msra.mxu0 %v4289_v35 }
  0x61   :  { %3297 = vmatprep.subr.bf16.mxu0 %v4103_v0 }
  0x62   :  { %3276 = vmatpush3.bf16.msra.mxu1 %v4315_v53 }
  0x63   :  { %3278 = vmatprep.subr.bf16.mxu1 %v4319_v54 }
  0x66   :  { %3280 = vmatpush3.bf16.msra.mxu1 %v4323_v57 }
  0x67   :  { %3282 = vmatprep.subr.bf16.mxu1 %v4329_v61 }
  0x6a   :  { %3284 = vmatpush3.bf16.msra.mxu1 %v4331_v63 }
  0x6b   :  { %3286 = vmatprep.subr.bf16.mxu1 %v4335_v4 }
  0x6e   :  { %3288 = vmatpush3.bf16.msra.mxu1 %v4337_v9 }
  0x6f   :  { %3290 = vmatprep.subr.bf16.mxu1 %v4341_v13 }
  0x72   :  { %3292 = vmatpush3.bf16.msra.mxu1 %v4343_v18 }
  0x73   :  { %3294 = vmatprep.subr.bf16.mxu1 %v4345_v19 }
  0x76   :  { %3296 = vmatpush3.bf16.msra.mxu1 %v4349_v23 }
  0x77   :  { %3322 = vmatprep.subr.bf16.mxu1 %v4293_v36 }
 0x116   :  { %v2891_v26 = vpop.f32.mrb[0].mxu0 }
 0x117   :  { %v4357_v28 = vadd.f32 %v2891_v26, %v2147_v25  ;;  %v158_v29 = vpop.f32.mrb[1].mxu0  ;;  %v624_v26 = vld [vmem:[#allocation7 + $0x1b8] sm:$0xff] }
 0x118   :  { %v4359_v31 = vadd.f32 %v2147_v25, %v158_v29  ;;  %v623_v25 = vld [vmem:[#allocation7 + $0x1b0] sm:$0xff]  ;;  %v4424_v29 = vpack.c.bf16 %v606_v22, %v605_v21  ;;  %v4459_v21 = vpack.c.bf16 %v632_v12, %v631_v11 }
 0x119   :  { %v615_v22 = vld [vmem:[#allocation7 + $0x170] sm:$0xff] }
 0x12c   :  { %v265_v32 = vpop.f32.mrb[0].mxu1 }
 0x12d   :  { %v269_v33 = vadd.f32 %v265_v32, %v4359_v31  ;;  %v2926_v34 = vpop.f32.mrb[1].mxu1  ;;  %v4427_v32 = vpack.c.bf16 %v624_v26, %v623_v25  ;;  %v616_v25 = vld [vmem:[#allocation7 + $0x178] sm:$0xff] }
 0x12e   :  { %v608_v34 = vld [vmem:[#allocation7 + $0x138] sm:$0xff]  ;;  %v4464_v26 = vpack.c.bf16 %v616_v25, %v615_v22 }
 0x12f   :  { %3955 = vtanh.f32 %v269_v33  ;;  %v607_v33 = vld [vmem:[#allocation7 + $0x130] sm:$0xff] }
 0x130   :  { %v4432_v39 = vpack.c.bf16 %v608_v34, %v607_v33 }
 0x139   :  { %v3956_v37 = vpop.eup %3955 }
 0x13a   :  { %2960 = vmatmul.mubr.f32.vlgmr.msra.gmra.mrb[2].mxu0 %v3956_v37  ;;  %442 = vmatmul.mubr.f32.vlgmr.msra.gmra.mrb[2].mxu1 %v3956_v37  ;;  %v625_v37 = vld [vmem:[#allocation7 + $0x1c0] sm:$0xff] }
 0x13b   :  { %3299 = vmatpush3.bf16.msra.mxu0 %v4212_v5  ;;  %3324 = vmatpush3.bf16.msra.mxu1 %v4297_v41 }
 0x13c   :  { %3300 = vmatprep.subr.bf16.mxu0 %v4103_v0  ;;  %3326 = vmatprep.subr.bf16.mxu1 %v4301_v42 }
 0x13d   :  { %2994 = vmatprep.mubr.msk.f32.mxu0 %vm4104_vm0, %v4105_v1 }
 0x13f   :  { %3302 = vmatpush3.bf16.msra.mxu0 %v4218_v7  ;;  %3328 = vmatpush3.bf16.msra.mxu1 %v4306_v47 }
 0x140   :  { %3303 = vmatprep.subr.bf16.mxu0 %v4103_v0  ;;  %3330 = vmatprep.subr.bf16.mxu1 %v4310_v48 }
 0x143   :  { %3305 = vmatpush3.bf16.msra.mxu0 %v4228_v17  ;;  %3332 = vmatpush3.bf16.msra.mxu1 %v4315_v53 }
 0x144   :  { %3306 = vmatprep.subr.bf16.mxu0 %v4103_v0  ;;  %3334 = vmatprep.subr.bf16.mxu1 %v4319_v54 }
 0x147   :  { %3308 = vmatpush3.bf16.msra.mxu0 %v4239_v20  ;;  %3336 = vmatpush3.bf16.msra.mxu1 %v4323_v57 }
 0x148   :  { %3309 = vmatprep.subr.bf16.mxu0 %v4103_v0  ;;  %3338 = vmatprep.subr.bf16.mxu1 %v4329_v61 }
 0x14b   :  { %3311 = vmatpush3.bf16.msra.mxu0 %v4251_v24  ;;  %3340 = vmatpush3.bf16.msra.mxu1 %v4331_v63 }
 0x14c   :  { %3312 = vmatprep.subr.bf16.mxu0 %v4103_v0  ;;  %3342 = vmatprep.subr.bf16.mxu1 %v4335_v4 }
 0x14f   :  { %3314 = vmatpush3.bf16.msra.mxu0 %v4265_v27  ;;  %3344 = vmatpush3.bf16.msra.mxu1 %v4337_v9 }
 0x150   :  { %3315 = vmatprep.subr.bf16.mxu0 %v4103_v0  ;;  %3346 = vmatprep.subr.bf16.mxu1 %v4341_v13 }
 0x153   :  { %3317 = vmatpush3.bf16.msra.mxu0 %v4277_v30  ;;  %3348 = vmatpush3.bf16.msra.mxu1 %v4343_v18 }
 0x154   :  { %3318 = vmatprep.subr.bf16.mxu0 %v4103_v0  ;;  %3350 = vmatprep.subr.bf16.mxu1 %v4345_v19 }
 0x157   :  { %3320 = vmatpush3.bf16.msra.mxu0 %v4289_v35  ;;  %3352 = vmatpush3.bf16.msra.mxu1 %v4349_v23 }
 0x158   :  { %3385 = vmatprep.subr.bf16.mxu1 %v4103_v0  ;;  %3354 = vmatprep.subr.bf16.mxu0 %v4395_v40 }
 0x20d   :  { %v337_v43 = vpop.f32.mrb[2].mxu0  ;;  %v2234_v44 = vpop.f32.mrb[2].mxu1 }
 0x20e   :  { %v342_v45 = vrot.slane %v337_v43, 6  ;;  %v2961_v46 = vpop.f32.mrb[3].mxu0  ;;  %v2235_v50 = vpop.f32.mrb[3].mxu1  ;;  %v4435_v43 = vpack.c.bf16 %v626_v38, %v625_v37 }
 0x20f   :  { %v2236_v51 = vadd.f32 %v2235_v50, %v2234_v44  ;;  %v609_v44 = vld [vmem:[#allocation7 + $0x140] sm:$0xff]  ;;  %v627_v46 = vld [vmem:[#allocation7 + $0x1d0] sm:$0xff]  ;;  %v628_v50 = vld [vmem:[#allocation7 + $0x1d8] sm:$0xff] }
 0x210   :  { %v344_v52 = vadd.f32 %v342_v45, %v4359_v31  ;;  %v610_v45 = vld [vmem:[#allocation7 + $0x148] sm:$0xff] }
 0x211   :  { %v444_v55 = vadd.f32 %v2236_v51, %v4401_v49  ;;  %v4440_v51 = vpack.c.bf16 %v610_v45, %v609_v44 }
 0x212   :  { %3957 = vtanh.f32 %v344_v52  ;;  %v4443_v52 = vpack.c.bf16 %v628_v50, %v627_v46 }
 0x213   :  { %3959 = vtanh.f32 %v444_v55  ;;  %v611_v55 = vld [vmem:[#allocation7 + $0x150] sm:$0xff] }
 0x214   :  { %v4448_v60 = vpack.c.bf16 %v612_v56, %v611_v55 }
 0x21c   :  { %v3958_v62 = vpop.eup %3957 }
 0x21d   :  { %v4407_v3 = vpop.eup %3959  ;;  %v450_v6 = vrot.slane %v3958_v62, 2  ;;  %v4451_v62 = vpack.c.bf16 %v630_v59, %v629_v58  ;;  %v4513_v59 = vld [vmem:[%s4857_s4 + $0x2] ss:$0 sm:$0xff] }
 0x21e   :  { %594 = vmatprep.mubr.f32.mxu1 %v4407_v3 }
 0x21f   :  { %2995 = vmatmul.mubr.f32.vlgmr.msra.gmra.mrb[4].mxu0 %v450_v6  ;;  %595 = vmatmul.mubr.f32.vlgmr.msra.gmra.mrb[4].mxu1 %v450_v6  ;;  %v613_v6 = vld [vmem:[#allocation7 + $0x160] sm:$0xff] }
 0x220   :  { %3356 = vmatpush3.bf16.msra.mxu0 %v4405_v2  ;;  %697 = vmatprep.mubr.f32.mxu0 %v4105_v1  ;;  %v4456_v14 = vpack.c.bf16 %v614_v10, %v613_v6 }
 0x221   :  { %3358 = vmatprep.subr.bf16.mxu0 %v4409_v8  ;;  %3387 = vmatpush3.bf16.msra.mxu1 %v4212_v5 }
 0x222   :  { %3388 = vmatprep.subr.bf16.mxu1 %v4103_v0  ;;  %3029 = vmatprep.mubr.msk.f32.mxu1 %vm4104_vm0, %v4105_v1 }
 0x224   :  { %3360 = vmatpush3.bf16.msra.mxu0 %v4413_v15 }
 0x225   :  { %3362 = vmatprep.subr.bf16.mxu0 %v4417_v16  ;;  %3390 = vmatpush3.bf16.msra.mxu1 %v4218_v7 }
 0x226   :  { %3391 = vmatprep.subr.bf16.mxu1 %v4103_v0 }
 0x228   :  { %3364 = vmatpush3.bf16.msra.mxu0 %v4424_v29 }
 0x229   :  { %3366 = vmatprep.subr.bf16.mxu0 %v4427_v32  ;;  %3393 = vmatpush3.bf16.msra.mxu1 %v4228_v17 }
 0x22a   :  { %3394 = vmatprep.subr.bf16.mxu1 %v4103_v0 }
 0x22c   :  { %3368 = vmatpush3.bf16.msra.mxu0 %v4432_v39 }
 0x22d   :  { %3370 = vmatprep.subr.bf16.mxu0 %v4435_v43  ;;  %3396 = vmatpush3.bf16.msra.mxu1 %v4239_v20 }
 0x22e   :  { %3397 = vmatprep.subr.bf16.mxu1 %v4103_v0 }
 0x230   :  { %3372 = vmatpush3.bf16.msra.mxu0 %v4440_v51 }
 0x231   :  { %3374 = vmatprep.subr.bf16.mxu0 %v4443_v52  ;;  %3399 = vmatpush3.bf16.msra.mxu1 %v4251_v24 }
 0x232   :  { %3400 = vmatprep.subr.bf16.mxu1 %v4103_v0 }
 0x234   :  { %3376 = vmatpush3.bf16.msra.mxu0 %v4448_v60 }
 0x235   :  { %3378 = vmatprep.subr.bf16.mxu0 %v4451_v62  ;;  %3402 = vmatpush3.bf16.msra.mxu1 %v4265_v27 }
 0x236   :  { %3403 = vmatprep.subr.bf16.mxu1 %v4103_v0 }
 0x238   :  { %3380 = vmatpush3.bf16.msra.mxu0 %v4456_v14 }
 0x239   :  { %3382 = vmatprep.subr.bf16.mxu0 %v4459_v21  ;;  %3405 = vmatpush3.bf16.msra.mxu1 %v4277_v30 }
 0x23a   :  { %3406 = vmatprep.subr.bf16.mxu1 %v4103_v0 }
 0x23c   :  { %3384 = vmatpush3.bf16.msra.mxu0 %v4464_v26 }
 0x23d   :  { %3410 = vmatprep.subr.bf16.mxu0 %v4293_v36  ;;  %3408 = vmatpush3.bf16.msra.mxu1 %v4289_v35 }
 0x23e   :  { %3442 = vmatprep.subr.bf16.mxu1 %v4395_v40 }
 0x23f   :  { %698 = vmatmul.mubr.f32.vlgmr.msra.gmra.mrb[6].mxu0 %v4407_v3 }
 0x240   :  { %3412 = vmatpush3.bf16.msra.mxu0 %v4297_v41 }
 0x241   :  { %3414 = vmatprep.subr.bf16.mxu0 %v4301_v42 }
 0x244   :  { %3416 = vmatpush3.bf16.msra.mxu0 %v4306_v47 }
 0x245   :  { %3418 = vmatprep.subr.bf16.mxu0 %v4310_v48 }
 0x248   :  { %3420 = vmatpush3.bf16.msra.mxu0 %v4315_v53 }
 0x249   :  { %3422 = vmatprep.subr.bf16.mxu0 %v4319_v54 }
 0x24c   :  { %3424 = vmatpush3.bf16.msra.mxu0 %v4323_v57 }
 0x24d   :  { %3426 = vmatprep.subr.bf16.mxu0 %v4329_v61 }
 0x250   :  { %3428 = vmatpush3.bf16.msra.mxu0 %v4331_v63 }
 0x251   :  { %3430 = vmatprep.subr.bf16.mxu0 %v4335_v4 }
 0x254   :  { %3432 = vmatpush3.bf16.msra.mxu0 %v4337_v9 }
 0x255   :  { %3434 = vmatprep.subr.bf16.mxu0 %v4341_v13 }
 0x258   :  { %3436 = vmatpush3.bf16.msra.mxu0 %v4343_v18 }
 0x259   :  { %3438 = vmatprep.subr.bf16.mxu0 %v4345_v19 }
 0x25c   :  { %3440 = vmatpush3.bf16.msra.mxu0 %v4349_v23 }
 0x25d   :  { %3473 = vmatprep.subr.bf16.mxu0 %v4103_v0 }
 0x2f2   :  { %v518_v3 = vpop.f32.mrb[4].mxu0  ;;  %v2286_v33 = vpop.f32.mrb[4].mxu1 }
 0x2f3   :  { %v523_v34 = vrot.slane %v518_v3, 4  ;;  %v2996_v37 = vpop.f32.mrb[5].mxu0  ;;  %v2287_v38 = vpop.f32.mrb[5].mxu1 }
 0x2f4   :  { %v2288_v44 = vadd.f32 %v2287_v38, %v2286_v33 }
 0x2f5   :  { %v525_v45 = vadd.f32 %v523_v34, %v4359_v31 }
 0x2f6   :  { %v597_v46 = vadd.f32 %v2288_v44, %v4401_v49 }
 0x2f7   :  { %3961 = vtanh.f32 %v525_v45 }
 0x2f8   :  { %3963 = vtanh.f32 %v597_v46 }
 0x301   :  { %v3962_v50 = vpop.eup %3961 }
 0x302   :  { %v3964_v55 = vpop.eup %3963  ;;  %v707_v56 = vrot.slane %v3962_v50, 4 }
 0x303   :  { %851 = vmatprep.mubr.f32.mxu0 %v3964_v55 }
 0x304   :  { %3030 = vmatmul.mubr.f32.vlgmr.msra.gmra.mrb[6].mxu1 %v707_v56  ;;  %852 = vmatmul.mubr.f32.vlgmr.msra.gmra.mrb[8].mxu0 %v707_v56 }
 0x305   :  { %3444 = vmatpush3.bf16.msra.mxu1 %v4405_v2  ;;  %3475 = vmatpush3.bf16.msra.mxu0 %v4212_v5 }
 0x306   :  { %3446 = vmatprep.subr.bf16.mxu1 %v4409_v8  ;;  %3476 = vmatprep.subr.bf16.mxu0 %v4103_v0 }
 0x307   :  { %3064 = vmatprep.mubr.msk.f32.mxu0 %vm4104_vm0, %v4105_v1 }
 0x309   :  { %3448 = vmatpush3.bf16.msra.mxu1 %v4413_v15  ;;  %3478 = vmatpush3.bf16.msra.mxu0 %v4218_v7 }
 0x30a   :  { %3450 = vmatprep.subr.bf16.mxu1 %v4417_v16  ;;  %3479 = vmatprep.subr.bf16.mxu0 %v4103_v0 }
 0x30d   :  { %3452 = vmatpush3.bf16.msra.mxu1 %v4424_v29  ;;  %3481 = vmatpush3.bf16.msra.mxu0 %v4228_v17 }
 0x30e   :  { %3454 = vmatprep.subr.bf16.mxu1 %v4427_v32  ;;  %3482 = vmatprep.subr.bf16.mxu0 %v4103_v0 }
 0x311   :  { %3456 = vmatpush3.bf16.msra.mxu1 %v4432_v39  ;;  %3484 = vmatpush3.bf16.msra.mxu0 %v4239_v20 }
 0x312   :  { %v2321_v58 = vpop.f32.mrb[6].mxu0  ;;  %3458 = vmatprep.subr.bf16.mxu1 %v4435_v43  ;;  %3485 = vmatprep.subr.bf16.mxu0 %v4103_v0 }
 0x313   :  { %v2322_v6 = vpop.f32.mrb[7].mxu0 }
 0x314   :  { %v2323_v10 = vadd.f32 %v2322_v6, %v2321_v58 }
 0x315   :  { %3460 = vmatpush3.bf16.msra.mxu1 %v4440_v51  ;;  %3487 = vmatpush3.bf16.msra.mxu0 %v4251_v24 }
 0x316   :  { %v700_v11 = vadd.f32 %v2323_v10, %v4513_v59  ;;  %3462 = vmatprep.subr.bf16.mxu1 %v4443_v52  ;;  %3488 = vmatprep.subr.bf16.mxu0 %v4103_v0 }
 0x318   :  { %3965 = vtanh.f32 %v700_v11 }
 0x319   :  { %3464 = vmatpush3.bf16.msra.mxu1 %v4448_v60  ;;  %3490 = vmatpush3.bf16.msra.mxu0 %v4265_v27 }
 0x31a   :  { %3466 = vmatprep.subr.bf16.mxu1 %v4451_v62  ;;  %3491 = vmatprep.subr.bf16.mxu0 %v4103_v0 }
 0x31d   :  { %3468 = vmatpush3.bf16.msra.mxu1 %v4456_v14  ;;  %3493 = vmatpush3.bf16.msra.mxu0 %v4277_v30 }
 0x31e   :  { %3470 = vmatprep.subr.bf16.mxu1 %v4459_v21  ;;  %3494 = vmatprep.subr.bf16.mxu0 %v4103_v0 }
 0x321   :  { %3472 = vmatpush3.bf16.msra.mxu1 %v4464_v26  ;;  %3496 = vmatpush3.bf16.msra.mxu0 %v4289_v35 }
 0x322   :  { %v3966_v12 = vpop.eup %3965  ;;  %3498 = vmatprep.subr.bf16.mxu1 %v4293_v36  ;;  %3530 = vmatprep.subr.bf16.mxu0 %v4395_v40 }
 0x323   :  { %921 = vmatprep.mubr.f32.mxu1 %v3966_v12 }
 0x324   :  { %922 = vmatmul.mubr.f32.vlgmr.msra.gmra.mrb[8].mxu1 %v3964_v55 }
 0x325   :  { %3500 = vmatpush3.bf16.msra.mxu1 %v4297_v41 }
 0x326   :  { %3502 = vmatprep.subr.bf16.mxu1 %v4301_v42 }
 0x329   :  { %3504 = vmatpush3.bf16.msra.mxu1 %v4306_v47 }
 0x32a   :  { %3506 = vmatprep.subr.bf16.mxu1 %v4310_v48 }
 0x32d   :  { %3508 = vmatpush3.bf16.msra.mxu1 %v4315_v53 }
 0x32e   :  { %3510 = vmatprep.subr.bf16.mxu1 %v4319_v54 }
 0x331   :  { %3512 = vmatpush3.bf16.msra.mxu1 %v4323_v57 }
 0x332   :  { %3514 = vmatprep.subr.bf16.mxu1 %v4329_v61 }
 0x335   :  { %3516 = vmatpush3.bf16.msra.mxu1 %v4331_v63 }
 0x336   :  { %3518 = vmatprep.subr.bf16.mxu1 %v4335_v4 }
 0x339   :  { %3520 = vmatpush3.bf16.msra.mxu1 %v4337_v9 }
 0x33a   :  { %3522 = vmatprep.subr.bf16.mxu1 %v4341_v13 }
 0x33d   :  { %3524 = vmatpush3.bf16.msra.mxu1 %v4343_v18 }
 0x33e   :  { %3526 = vmatprep.subr.bf16.mxu1 %v4345_v19 }
 0x341   :  { %3528 = vmatpush3.bf16.msra.mxu1 %v4349_v23 }
 0x342   :  { %3561 = vmatprep.subr.bf16.mxu1 %v4103_v0 }
 0x3d7   :  { %v775_v22 = vpop.f32.mrb[6].mxu1  ;;  %v2373_v25 = vpop.f32.mrb[8].mxu0 }
 0x3d8   :  { %v780_v3 = vrot.slane %v775_v22, 2  ;;  %v3031_v33 = vpop.f32.mrb[7].mxu1  ;;  %v2374_v34 = vpop.f32.mrb[9].mxu0 }
 0x3d9   :  { %v2375_v37 = vadd.f32 %v2374_v34, %v2373_v25 }
 0x3da   :  { %v782_v38 = vadd.f32 %v780_v3, %v4359_v31 }
 0x3db   :  { %v854_v44 = vadd.f32 %v2375_v37, %v4401_v49 }
 0x3dc   :  { %3967 = vtanh.f32 %v782_v38 }
 0x3dd   :  { %3969 = vtanh.f32 %v854_v44 }
 0x3e6   :  { %v3968_v45 = vpop.eup %3967 }
 0x3e7   :  { %v3970_v46 = vpop.eup %3969  ;;  %v931_v50 = vrot.slane %v3968_v45, 6 }
 0x3e8   :  { %1072 = vmatprep.mubr.f32.mxu1 %v3970_v46 }
 0x3e9   :  { %3065 = vmatmul.mubr.f32.vlgmr.msra.gmra.mrb[10].mxu0 %v931_v50  ;;  %1073 = vmatmul.mubr.f32.vlgmr.msra.gmra.mrb[10].mxu1 %v931_v50 }
 0x3ea   :  { %3532 = vmatpush3.bf16.msra.mxu0 %v4405_v2  ;;  %3563 = vmatpush3.bf16.msra.mxu1 %v4212_v5 }
 0x3eb   :  { %3534 = vmatprep.subr.bf16.mxu0 %v4409_v8  ;;  %3564 = vmatprep.subr.bf16.mxu1 %v4103_v0 }
 0x3ec   :  { %3099 = vmatprep.mubr.msk.f32.mxu1 %vm4104_vm0, %v4105_v1 }
 0x3ee   :  { %3536 = vmatpush3.bf16.msra.mxu0 %v4413_v15  ;;  %3566 = vmatpush3.bf16.msra.mxu1 %v4218_v7 }
 0x3ef   :  { %3538 = vmatprep.subr.bf16.mxu0 %v4417_v16  ;;  %3567 = vmatprep.subr.bf16.mxu1 %v4103_v0 }
 0x3f2   :  { %3540 = vmatpush3.bf16.msra.mxu0 %v4424_v29  ;;  %3569 = vmatpush3.bf16.msra.mxu1 %v4228_v17 }
 0x3f3   :  { %3542 = vmatprep.subr.bf16.mxu0 %v4427_v32  ;;  %3570 = vmatprep.subr.bf16.mxu1 %v4103_v0 }
 0x3f6   :  { %3544 = vmatpush3.bf16.msra.mxu0 %v4432_v39  ;;  %3572 = vmatpush3.bf16.msra.mxu1 %v4239_v20 }
 0x3f7   :  { %v2408_v31 = vpop.f32.mrb[8].mxu1  ;;  %3546 = vmatprep.subr.bf16.mxu0 %v4435_v43  ;;  %3573 = vmatprep.subr.bf16.mxu1 %v4103_v0 }
 0x3f8   :  { %v2409_v55 = vpop.f32.mrb[9].mxu1 }
 0x3f9   :  { %v2410_v56 = vadd.f32 %v2409_v55, %v2408_v31 }
 0x3fa   :  { %3548 = vmatpush3.bf16.msra.mxu0 %v4440_v51  ;;  %3575 = vmatpush3.bf16.msra.mxu1 %v4251_v24 }
 0x3fb   :  { %v924_v58 = vadd.f32 %v2410_v56, %v4513_v59  ;;  %3550 = vmatprep.subr.bf16.mxu0 %v4443_v52  ;;  %3576 = vmatprep.subr.bf16.mxu1 %v4103_v0 }
 0x3fd   :  { %3971 = vtanh.f32 %v924_v58 }
 0x3fe   :  { %3552 = vmatpush3.bf16.msra.mxu0 %v4448_v60  ;;  %3578 = vmatpush3.bf16.msra.mxu1 %v4265_v27 }
 0x3ff   :  { %3554 = vmatprep.subr.bf16.mxu0 %v4451_v62  ;;  %3579 = vmatprep.subr.bf16.mxu1 %v4103_v0 }
 0x402   :  { %3556 = vmatpush3.bf16.msra.mxu0 %v4456_v14  ;;  %3581 = vmatpush3.bf16.msra.mxu1 %v4277_v30 }
 0x403   :  { %3558 = vmatprep.subr.bf16.mxu0 %v4459_v21  ;;  %3582 = vmatprep.subr.bf16.mxu1 %v4103_v0 }
 0x406   :  { %3560 = vmatpush3.bf16.msra.mxu0 %v4464_v26  ;;  %3584 = vmatpush3.bf16.msra.mxu1 %v4289_v35 }
 0x407   :  { %v3972_v6 = vpop.eup %3971  ;;  %3586 = vmatprep.subr.bf16.mxu0 %v4293_v36  ;;  %3618 = vmatprep.subr.bf16.mxu1 %v4395_v40 }
 0x408   :  { %1142 = vmatprep.mubr.f32.mxu0 %v3972_v6 }
 0x409   :  { %1143 = vmatmul.mubr.f32.vlgmr.msra.gmra.mrb[12].mxu0 %v3970_v46 }
 0x40a   :  { %3588 = vmatpush3.bf16.msra.mxu0 %v4297_v41 }
 0x40b   :  { %3590 = vmatprep.subr.bf16.mxu0 %v4301_v42 }
 0x40e   :  { %3592 = vmatpush3.bf16.msra.mxu0 %v4306_v47 }
 0x40f   :  { %3594 = vmatprep.subr.bf16.mxu0 %v4310_v48 }
 0x412   :  { %3596 = vmatpush3.bf16.msra.mxu0 %v4315_v53 }
 0x413   :  { %3598 = vmatprep.subr.bf16.mxu0 %v4319_v54 }
 0x416   :  { %3600 = vmatpush3.bf16.msra.mxu0 %v4323_v57 }
 0x417   :  { %3602 = vmatprep.subr.bf16.mxu0 %v4329_v61 }
 0x41a   :  { %3604 = vmatpush3.bf16.msra.mxu0 %v4331_v63 }
 0x41b   :  { %3606 = vmatprep.subr.bf16.mxu0 %v4335_v4 }
 0x41e   :  { %3608 = vmatpush3.bf16.msra.mxu0 %v4337_v9 }
 0x41f   :  { %3610 = vmatprep.subr.bf16.mxu0 %v4341_v13 }
 0x422   :  { %3612 = vmatpush3.bf16.msra.mxu0 %v4343_v18 }
 0x423   :  { %3614 = vmatprep.subr.bf16.mxu0 %v4345_v19 }
 0x426   :  { %3616 = vmatpush3.bf16.msra.mxu0 %v4349_v23 }
 0x427   :  { %3649 = vmatprep.subr.bf16.mxu0 %v4103_v0 }
 0x4bc   :  { %v999_v10 = vpop.f32.mrb[10].mxu0  ;;  %v2460_v11 = vpop.f32.mrb[10].mxu1 }
 0x4bd   :  { %v1003_v12 = vadd.f32 %v999_v10, %v4357_v28  ;;  %v3066_v22 = vpop.f32.mrb[11].mxu0  ;;  %v2461_v25 = vpop.f32.mrb[11].mxu1 }
 0x4be   :  { %v2462_v3 = vadd.f32 %v2461_v25, %v2460_v11 }
 0x4bf   :  { %3973 = vtanh.f32 %v1003_v12 }
 0x4c0   :  { %v1075_v33 = vadd.f32 %v2462_v3, %v4401_v49 }
 0x4c2   :  { %3975 = vtanh.f32 %v1075_v33 }
 0x4c9   :  { %v3974_v34 = vpop.eup %3973 }
 0x4ca   :  { %3100 = vmatmul.mubr.f32.vlgmr.msra.gmra.mrb[12].mxu1 %v3974_v34 }
 0x4cb   :  { %3620 = vmatpush3.bf16.msra.mxu1 %v4405_v2 }
 0x4cc   :  { %v3976_v37 = vpop.eup %3975  ;;  %3622 = vmatprep.subr.bf16.mxu1 %v4409_v8 }
 0x4cd   :  { %1289 = vmatprep.mubr.f32.mxu0 %v3976_v37 }
 0x4ce   :  { %1290 = vmatmul.mubr.f32.vlgmr.msra.gmra.mrb[14].mxu0 %v3974_v34 }
 0x4cf   :  { %3624 = vmatpush3.bf16.msra.mxu1 %v4413_v15  ;;  %3651 = vmatpush3.bf16.msra.mxu0 %v4212_v5 }
 0x4d0   :  { %3626 = vmatprep.subr.bf16.mxu1 %v4417_v16  ;;  %3652 = vmatprep.subr.bf16.mxu0 %v4103_v0 }
 0x4d1   :  { %3134 = vmatprep.mubr.msk.f32.mxu0 %vm4104_vm0, %v4105_v1 }
 0x4d3   :  { %3628 = vmatpush3.bf16.msra.mxu1 %v4424_v29  ;;  %3654 = vmatpush3.bf16.msra.mxu0 %v4218_v7 }
 0x4d4   :  { %3630 = vmatprep.subr.bf16.mxu1 %v4427_v32  ;;  %3655 = vmatprep.subr.bf16.mxu0 %v4103_v0 }
 0x4d7   :  { %3632 = vmatpush3.bf16.msra.mxu1 %v4432_v39  ;;  %3657 = vmatpush3.bf16.msra.mxu0 %v4228_v17 }
 0x4d8   :  { %3634 = vmatprep.subr.bf16.mxu1 %v4435_v43  ;;  %3658 = vmatprep.subr.bf16.mxu0 %v4103_v0 }
 0x4db   :  { %3636 = vmatpush3.bf16.msra.mxu1 %v4440_v51  ;;  %3660 = vmatpush3.bf16.msra.mxu0 %v4239_v20 }
 0x4dc   :  { %v2495_v38 = vpop.f32.mrb[12].mxu0  ;;  %3638 = vmatprep.subr.bf16.mxu1 %v4443_v52  ;;  %3661 = vmatprep.subr.bf16.mxu0 %v4103_v0 }
 0x4dd   :  { %v2496_v44 = vpop.f32.mrb[13].mxu0 }
 0x4de   :  { %v2497_v45 = vadd.f32 %v2496_v44, %v2495_v38 }
 0x4df   :  { %3640 = vmatpush3.bf16.msra.mxu1 %v4448_v60  ;;  %3663 = vmatpush3.bf16.msra.mxu0 %v4251_v24 }
 0x4e0   :  { %v1145_v46 = vadd.f32 %v2497_v45, %v4513_v59  ;;  %3642 = vmatprep.subr.bf16.mxu1 %v4451_v62  ;;  %3664 = vmatprep.subr.bf16.mxu0 %v4103_v0 }
 0x4e2   :  { %3977 = vtanh.f32 %v1145_v46 }
 0x4e3   :  { %3644 = vmatpush3.bf16.msra.mxu1 %v4456_v14  ;;  %3666 = vmatpush3.bf16.msra.mxu0 %v4265_v27 }
 0x4e4   :  { %3646 = vmatprep.subr.bf16.mxu1 %v4459_v21  ;;  %3667 = vmatprep.subr.bf16.mxu0 %v4103_v0 }
 0x4e7   :  { %3648 = vmatpush3.bf16.msra.mxu1 %v4464_v26  ;;  %3669 = vmatpush3.bf16.msra.mxu0 %v4277_v30 }
 0x4e8   :  { %3674 = vmatprep.subr.bf16.mxu1 %v4293_v36  ;;  %3670 = vmatprep.subr.bf16.mxu0 %v4103_v0 }
 0x4eb   :  { %3672 = vmatpush3.bf16.msra.mxu0 %v4289_v35 }
 0x4ec   :  { %v3978_v50 = vpop.eup %3977  ;;  %3706 = vmatprep.subr.bf16.mxu0 %v4395_v40 }
 0x4ed   :  { %1359 = vmatprep.mubr.f32.mxu1 %v3978_v50 }
 0x4ee   :  { %1360 = vmatmul.mubr.f32.vlgmr.msra.gmra.mrb[14].mxu1 %v3976_v37 }
 0x4ef   :  { %3676 = vmatpush3.bf16.msra.mxu1 %v4297_v41 }
 0x4f0   :  { %3678 = vmatprep.subr.bf16.mxu1 %v4301_v42 }
 0x4f3   :  { %3680 = vmatpush3.bf16.msra.mxu1 %v4306_v47 }
 0x4f4   :  { %3682 = vmatprep.subr.bf16.mxu1 %v4310_v48 }
 0x4f7   :  { %3684 = vmatpush3.bf16.msra.mxu1 %v4315_v53 }
 0x4f8   :  { %3686 = vmatprep.subr.bf16.mxu1 %v4319_v54 }
 0x4fb   :  { %3688 = vmatpush3.bf16.msra.mxu1 %v4323_v57 }
 0x4fc   :  { %3690 = vmatprep.subr.bf16.mxu1 %v4329_v61 }
 0x4ff   :  { %3692 = vmatpush3.bf16.msra.mxu1 %v4331_v63 }
 0x500   :  { %3694 = vmatprep.subr.bf16.mxu1 %v4335_v4 }
 0x503   :  { %3696 = vmatpush3.bf16.msra.mxu1 %v4337_v9 }
 0x504   :  { %3698 = vmatprep.subr.bf16.mxu1 %v4341_v13 }
 0x507   :  { %3700 = vmatpush3.bf16.msra.mxu1 %v4343_v18 }
 0x508   :  { %3702 = vmatprep.subr.bf16.mxu1 %v4345_v19 }
 0x50b   :  { %3704 = vmatpush3.bf16.msra.mxu1 %v4349_v23 }
 0x50c   :  { %3737 = vmatprep.subr.bf16.mxu1 %v4103_v0 }
 0x59d   :  { %v1217_v31 = vpop.f32.mrb[12].mxu1 }
 0x59e   :  { %v1222_v55 = vrot.slane %v1217_v31, 6  ;;  %v3101_v56 = vpop.f32.mrb[13].mxu1 }
 0x5a0   :  { %v1224_v58 = vadd.f32 %v1222_v55, %v4357_v28 }
 0x5a1   :  { %v2547_v6 = vpop.f32.mrb[14].mxu0 }
 0x5a2   :  { %3979 = vtanh.f32 %v1224_v58  ;;  %v2548_v10 = vpop.f32.mrb[15].mxu0 }
 0x5a3   :  { %v2549_v11 = vadd.f32 %v2548_v10, %v2547_v6  ;;  %v4003_v6 = vld [vmem:[%s4857_s4 + $0x1] ss:$0 sm:$0xff] }
 0x5a5   :  { %v1292_v12 = vadd.f32 %v2549_v11, %v4401_v49 }
 0x5a7   :  { %3981 = vtanh.f32 %v1292_v12 }
 0x5ac   :  { %v3980_v22 = vpop.eup %3979 }
 0x5ad   :  { %v1369_v25 = vrot.slane %v3980_v22, 2 }
 0x5af   :  { %3135 = vmatmul.mubr.f32.vlgmr.msra.gmra.mrb[16].mxu0 %v1369_v25 }
 0x5b0   :  { %3708 = vmatpush3.bf16.msra.mxu0 %v4405_v2 }
 0x5b1   :  { %v3982_v3 = vpop.eup %3981  ;;  %3710 = vmatprep.subr.bf16.mxu0 %v4409_v8 }
 0x5b2   :  { %1513 = vmatprep.mubr.f32.mxu1 %v3982_v3 }
 0x5b3   :  { %1514 = vmatmul.mubr.f32.vlgmr.msra.gmra.mrb[16].mxu1 %v1369_v25  ;;  %v2044_v25 = vld [vmem:[%s4858_s5 + $0x40] sm:$0xff] }
 0x5b4   :  { %3712 = vmatpush3.bf16.msra.mxu0 %v4413_v15  ;;  %3739 = vmatpush3.bf16.msra.mxu1 %v4212_v5 }
 0x5b5   :  { %3714 = vmatprep.subr.bf16.mxu0 %v4417_v16  ;;  %3740 = vmatprep.subr.bf16.mxu1 %v4103_v0 }
 0x5b6   :  { %3169 = vmatprep.mubr.msk.f32.mxu1 %vm4104_vm0, %v4105_v1 }
 0x5b8   :  { %3716 = vmatpush3.bf16.msra.mxu0 %v4424_v29  ;;  %3742 = vmatpush3.bf16.msra.mxu1 %v4218_v7 }
 0x5b9   :  { %3718 = vmatprep.subr.bf16.mxu0 %v4427_v32  ;;  %3743 = vmatprep.subr.bf16.mxu1 %v4103_v0 }
 0x5bc   :  { %3720 = vmatpush3.bf16.msra.mxu0 %v4432_v39  ;;  %3745 = vmatpush3.bf16.msra.mxu1 %v4228_v17 }
 0x5bd   :  { %3722 = vmatprep.subr.bf16.mxu0 %v4435_v43  ;;  %3746 = vmatprep.subr.bf16.mxu1 %v4103_v0 }
 0x5c0   :  { %3724 = vmatpush3.bf16.msra.mxu0 %v4440_v51  ;;  %3748 = vmatpush3.bf16.msra.mxu1 %v4239_v20 }
 0x5c1   :  { %v2582_v5 = vpop.f32.mrb[14].mxu1  ;;  %3726 = vmatprep.subr.bf16.mxu0 %v4443_v52  ;;  %3749 = vmatprep.subr.bf16.mxu1 %v4103_v0 }
 0x5c2   :  { %v2583_v7 = vpop.f32.mrb[15].mxu1 }
 0x5c3   :  { %v2584_v33 = vadd.f32 %v2583_v7, %v2582_v5  ;;  %v2046_v7 = vld [vmem:[%s4858_s5 + $0x50] sm:$0xff] }
 0x5c4   :  { %3728 = vmatpush3.bf16.msra.mxu0 %v4448_v60  ;;  %3751 = vmatpush3.bf16.msra.mxu1 %v4251_v24 }
 0x5c5   :  { %v1362_v17 = vadd.f32 %v2584_v33, %v4513_v59  ;;  %3730 = vmatprep.subr.bf16.mxu0 %v4451_v62  ;;  %3752 = vmatprep.subr.bf16.mxu1 %v4103_v0  ;;  %v2047_v33 = vld [vmem:[%s4858_s5 + $0x58] sm:$0xff] }
 0x5c7   :  { %3983 = vtanh.f32 %v1362_v17  ;;  %v3937_v17 = vpack.c.bf16 %v2047_v33, %v2046_v7 }
 0x5c8   :  { %3732 = vmatpush3.bf16.msra.mxu0 %v4456_v14  ;;  %3754 = vmatpush3.bf16.msra.mxu1 %v4265_v27 }
 0x5c9   :  { %3734 = vmatprep.subr.bf16.mxu0 %v4459_v21  ;;  %3755 = vmatprep.subr.bf16.mxu1 %v4103_v0 }
 0x5cc   :  { %3736 = vmatpush3.bf16.msra.mxu0 %v4464_v26  ;;  %3757 = vmatpush3.bf16.msra.mxu1 %v4277_v30 }
 0x5cd   :  { %3762 = vmatprep.subr.bf16.mxu0 %v4293_v36  ;;  %3758 = vmatprep.subr.bf16.mxu1 %v4103_v0 }
 0x5d0   :  { %3760 = vmatpush3.bf16.msra.mxu1 %v4289_v35 }
 0x5d1   :  { %v3984_v20 = vpop.eup %3983  ;;  %3794 = vmatprep.subr.bf16.mxu1 %v4395_v40 }
 0x5d2   :  { %1583 = vmatprep.mubr.f32.mxu0 %v3984_v20  ;;  %v2048_v20 = vld [vmem:[%s4858_s5 + $0x60] sm:$0xff] }
 0x5d3   :  { %1584 = vmatmul.mubr.f32.vlgmr.msra.gmra.mrb[18].mxu0 %v3982_v3  ;;  %v2045_v3 = vld [vmem:[%s4858_s5 + $0x48] sm:$0xff] }
 0x5d4   :  { %3764 = vmatpush3.bf16.msra.mxu0 %v4297_v41  ;;  %v3934_v5 = vpack.c.bf16 %v2045_v3, %v2044_v25 }
 0x5d5   :  { %3766 = vmatprep.subr.bf16.mxu0 %v4301_v42 }
 0x5d8   :  { %3768 = vmatpush3.bf16.msra.mxu0 %v4306_v47 }
 0x5d9   :  { %3770 = vmatprep.subr.bf16.mxu0 %v4310_v48 }
 0x5dc   :  { %3772 = vmatpush3.bf16.msra.mxu0 %v4315_v53 }
 0x5dd   :  { %3774 = vmatprep.subr.bf16.mxu0 %v4319_v54 }
 0x5e0   :  { %3776 = vmatpush3.bf16.msra.mxu0 %v4323_v57 }
 0x5e1   :  { %3778 = vmatprep.subr.bf16.mxu0 %v4329_v61 }
 0x5e4   :  { %3780 = vmatpush3.bf16.msra.mxu0 %v4331_v63 }
 0x5e5   :  { %3782 = vmatprep.subr.bf16.mxu0 %v4335_v4 }
 0x5e8   :  { %3784 = vmatpush3.bf16.msra.mxu0 %v4337_v9 }
 0x5e9   :  { %3786 = vmatprep.subr.bf16.mxu0 %v4341_v13 }
 0x5ec   :  { %3788 = vmatpush3.bf16.msra.mxu0 %v4343_v18 }
 0x5ed   :  { %3790 = vmatprep.subr.bf16.mxu0 %v4345_v19 }
 0x5f0   :  { %3792 = vmatpush3.bf16.msra.mxu0 %v4349_v23 }
 0x5f1   :  { %3826 = vmatprep.subr.bf16.mxu0 %v4293_v36 }
 0x682   :  { %v1437_v24 = vpop.f32.mrb[16].mxu0 }
 0x683   :  { %v1442_v27 = vrot.slane %v1437_v24, 4  ;;  %v3136_v30 = vpop.f32.mrb[17].mxu0  ;;  %v2049_v24 = vld [vmem:[%s4858_s5 + $0x68] sm:$0xff] }
 0x684   :  { %v2050_v30 = vld [vmem:[%s4858_s5 + $0x70] sm:$0xff] }
 0x685   :  { %v1444_v35 = vadd.f32 %v1442_v27, %v4357_v28  ;;  %v3940_v27 = vpack.c.bf16 %v2049_v24, %v2048_v20 }
 0x686   :  { %v2634_v34 = vpop.f32.mrb[16].mxu1 }
 0x687   :  { %3985 = vtanh.f32 %v1444_v35  ;;  %v2635_v37 = vpop.f32.mrb[17].mxu1  ;;  %v2051_v35 = vld [vmem:[%s4858_s5 + $0x78] sm:$0xff] }
 0x688   :  { %v2636_v38 = vadd.f32 %v2635_v37, %v2634_v34  ;;  %v3943_v34 = vpack.c.bf16 %v2051_v35, %v2050_v30 }
 0x68a   :  { %v1516_v44 = vadd.f32 %v2636_v38, %v4401_v49 }
 0x68c   :  { %3987 = vtanh.f32 %v1516_v44 }
 0x691   :  { %v3986_v45 = vpop.eup %3985 }
 0x692   :  { %v1593_v46 = vrot.slane %v3986_v45, 4 }
 0x694   :  { %3170 = vmatmul.mubr.f32.vlgmr.msra.gmra.mrb[18].mxu1 %v1593_v46 }
 0x695   :  { %3796 = vmatpush3.bf16.msra.mxu1 %v4405_v2 }
 0x696   :  { %v3988_v50 = vpop.eup %3987  ;;  %3798 = vmatprep.subr.bf16.mxu1 %v4409_v8 }
 0x697   :  { %1737 = vmatprep.mubr.f32.mxu0 %v3988_v50 }
 0x698   :  { %1738 = vmatmul.mubr.f32.vlgmr.msra.gmra.mrb[20].mxu0 %v1593_v46 }
 0x699   :  { %3800 = vmatpush3.bf16.msra.mxu1 %v4413_v15  ;;  %3828 = vmatpush3.bf16.msra.mxu0 %v4297_v41 }
 0x69a   :  { %3802 = vmatprep.subr.bf16.mxu1 %v4417_v16  ;;  %3830 = vmatprep.subr.bf16.mxu0 %v4301_v42 }
 0x69d   :  { %3804 = vmatpush3.bf16.msra.mxu1 %v4424_v29  ;;  %3832 = vmatpush3.bf16.msra.mxu0 %v4306_v47 }
 0x69e   :  { %3806 = vmatprep.subr.bf16.mxu1 %v4427_v32  ;;  %3834 = vmatprep.subr.bf16.mxu0 %v4310_v48 }
 0x6a1   :  { %3808 = vmatpush3.bf16.msra.mxu1 %v4432_v39  ;;  %3836 = vmatpush3.bf16.msra.mxu0 %v4315_v53 }
 0x6a2   :  { %3810 = vmatprep.subr.bf16.mxu1 %v4435_v43  ;;  %3838 = vmatprep.subr.bf16.mxu0 %v4319_v54 }
 0x6a5   :  { %3812 = vmatpush3.bf16.msra.mxu1 %v4440_v51  ;;  %3840 = vmatpush3.bf16.msra.mxu0 %v4323_v57 }
 0x6a6   :  { %v2669_v36 = vpop.f32.mrb[18].mxu0  ;;  %3814 = vmatprep.subr.bf16.mxu1 %v4443_v52  ;;  %3842 = vmatprep.subr.bf16.mxu0 %v4329_v61 }
 0x6a7   :  { %v2670_v41 = vpop.f32.mrb[19].mxu0 }
 0x6a8   :  { %v2671_v42 = vadd.f32 %v2670_v41, %v2669_v36 }
 0x6a9   :  { %3816 = vmatpush3.bf16.msra.mxu1 %v4448_v60  ;;  %3844 = vmatpush3.bf16.msra.mxu0 %v4331_v63 }
 0x6aa   :  { %v1586_v47 = vadd.f32 %v2671_v42, %v4513_v59  ;;  %3818 = vmatprep.subr.bf16.mxu1 %v4451_v62  ;;  %3846 = vmatprep.subr.bf16.mxu0 %v4335_v4 }
 0x6ac   :  { %3989 = vtanh.f32 %v1586_v47 }
 0x6ad   :  { %3820 = vmatpush3.bf16.msra.mxu1 %v4456_v14  ;;  %3848 = vmatpush3.bf16.msra.mxu0 %v4337_v9 }
 0x6ae   :  { %3822 = vmatprep.subr.bf16.mxu1 %v4459_v21  ;;  %3850 = vmatprep.subr.bf16.mxu0 %v4341_v13 }
 0x6b1   :  { %3824 = vmatpush3.bf16.msra.mxu1 %v4464_v26  ;;  %3852 = vmatpush3.bf16.msra.mxu0 %v4343_v18 }
 0x6b2   :  { %3854 = vmatprep.subr.bf16.mxu0 %v4345_v19  ;;  %3858 = vmatprep.subr.bf16.mxu1 %v4395_v40 }
 0x6b5   :  { %3856 = vmatpush3.bf16.msra.mxu0 %v4349_v23 }
 0x6b6   :  { %v3990_v48 = vpop.eup %3989  ;;  %3890 = vmatprep.subr.bf16.mxu0 %v4395_v40 }
 0x6b7   :  { %1807 = vmatprep.mubr.f32.mxu1 %v3990_v48 }
 0x6b8   :  { %1808 = vmatmul.mubr.f32.vlgmr.msra.gmra.mrb[20].mxu1 %v3988_v50  ;;  %v2161_v50 = vld [vmem:[%s4859_s6] ss:$0 sm:$0xff] }
 0x6b9   :  { %3860 = vmatpush3.bf16.msra.mxu1 %v4405_v2 }
 0x6ba   :  { %3862 = vmatprep.subr.bf16.mxu1 %v4409_v8 }
 0x6bd   :  { %3864 = vmatpush3.bf16.msra.mxu1 %v4413_v15 }
 0x6be   :  { %3866 = vmatprep.subr.bf16.mxu1 %v4417_v16 }
 0x6c1   :  { %3868 = vmatpush3.bf16.msra.mxu1 %v4424_v29 }
 0x6c2   :  { %3870 = vmatprep.subr.bf16.mxu1 %v4427_v32 }
 0x6c5   :  { %3872 = vmatpush3.bf16.msra.mxu1 %v4432_v39 }
 0x6c6   :  { %3874 = vmatprep.subr.bf16.mxu1 %v4435_v43 }
 0x6c9   :  { %3876 = vmatpush3.bf16.msra.mxu1 %v4440_v51 }
 0x6ca   :  { %3878 = vmatprep.subr.bf16.mxu1 %v4443_v52 }
 0x6cd   :  { %3880 = vmatpush3.bf16.msra.mxu1 %v4448_v60 }
 0x6ce   :  { %3882 = vmatprep.subr.bf16.mxu1 %v4451_v62 }
 0x6d1   :  { %3884 = vmatpush3.bf16.msra.mxu1 %v4456_v14 }
 0x6d2   :  { %3886 = vmatprep.subr.bf16.mxu1 %v4459_v21 }
 0x6d5   :  { %3888 = vmatpush3.bf16.msra.mxu1 %v4464_v26 }
 0x6d6   :  { %3921 = vmatprep.subr.bf16.mxu1 %v4103_v0 }
 0x767   :  { %v1661_v53 = vpop.f32.mrb[18].mxu1 }
 0x768   :  { %v1666_v54 = vrot.slane %v1661_v53, 2  ;;  %v3171_v57 = vpop.f32.mrb[19].mxu1 }
 0x76a   :  { %v1668_v61 = vadd.f32 %v1666_v54, %v4357_v28 }
 0x76b   :  { %v2721_v63 = vpop.f32.mrb[20].mxu0 }
 0x76c   :  { %v2722_v4 = vpop.f32.mrb[21].mxu0  ;;  %3991 = vtanh.f32 %v1668_v61 }
 0x76d   :  { %v2723_v9 = vadd.f32 %v2722_v4, %v2721_v63 }
 0x76f   :  { %v1740_v13 = vadd.f32 %v2723_v9, %v4401_v49 }
 0x771   :  { %3993 = vtanh.f32 %v1740_v13 }
 0x776   :  { %v3992_v18 = vpop.eup %3991 }
 0x777   :  { %v1819_v23 = vrot.slane %v3992_v18, 6 }
 0x77b   :  { %v3994_v19 = vpop.eup %3993 }
 0x77c   :  { %1887 = vmatprep.mubr.f32.mxu0 %v3994_v19 }
 0x77d   :  { %1888 = vmatmul.mubr.f32.vlgmr.msra.gmra.mrb[22].mxu0 %v1819_v23 }
 0x77e   :  { %3892 = vmatpush3.bf16.msra.mxu0 %v4405_v2 }
 0x77f   :  { %3894 = vmatprep.subr.bf16.mxu0 %v4409_v8 }
 0x782   :  { %3896 = vmatpush3.bf16.msra.mxu0 %v4413_v15  ;;  %v2036_v15 = vld [vmem:[%s4858_s5] sm:$0xff] }
 0x783   :  { %3898 = vmatprep.subr.bf16.mxu0 %v4417_v16  ;;  %v2037_v16 = vld [vmem:[%s4858_s5 + $0x8] sm:$0xff] }
 0x786   :  { %3900 = vmatpush3.bf16.msra.mxu0 %v4424_v29  ;;  %v2038_v29 = vld [vmem:[%s4858_s5 + $0x10] sm:$0xff] }
 0x787   :  { %3902 = vmatprep.subr.bf16.mxu0 %v4427_v32  ;;  %v3922_v32 = vpack.c.bf16 %v2037_v16, %v2036_v15 }
 0x78a   :  { %3904 = vmatpush3.bf16.msra.mxu0 %v4432_v39  ;;  %v2039_v39 = vld [vmem:[%s4858_s5 + $0x18] sm:$0xff] }
 0x78b   :  { %v2756_v28 = vpop.f32.mrb[20].mxu1  ;;  %3906 = vmatprep.subr.bf16.mxu0 %v4435_v43  ;;  %v3925_v43 = vpack.c.bf16 %v2039_v39, %v2038_v29 }
 0x78c   :  { %v2757_v40 = vpop.f32.mrb[21].mxu1 }
 0x78d   :  { %v2758_v49 = vadd.f32 %v2757_v40, %v2756_v28 }
 0x78e   :  { %3908 = vmatpush3.bf16.msra.mxu0 %v4440_v51  ;;  %v2041_v51 = vld [vmem:[%s4858_s5 + $0x28] sm:$0xff] }
 0x78f   :  { %v1810_v2 = vadd.f32 %v2758_v49, %v4513_v59  ;;  %3910 = vmatprep.subr.bf16.mxu0 %v4443_v52 }
 0x791   :  { %3995 = vtanh.f32 %v1810_v2 }
 0x792   :  { %3912 = vmatpush3.bf16.msra.mxu0 %v4448_v60  ;;  %v2042_v60 = vld [vmem:[%s4858_s5 + $0x30] sm:$0xff] }
 0x793   :  { %3914 = vmatprep.subr.bf16.mxu0 %v4451_v62  ;;  %v2043_v62 = vld [vmem:[%s4858_s5 + $0x38] sm:$0xff] }
 0x796   :  { %3916 = vmatpush3.bf16.msra.mxu0 %v4456_v14  ;;  %v3931_v14 = vpack.c.bf16 %v2043_v62, %v2042_v60 }
 0x797   :  { %3918 = vmatprep.subr.bf16.mxu0 %v4459_v21 }
 0x79a   :  { %3920 = vmatpush3.bf16.msra.mxu0 %v4464_v26 }
 0x79b   :  { %v3996_v8 = vpop.eup %3995 }
 0x79c   :  { %1957 = vmatprep.mubr.f32.mxu1 %v3996_v8 }
 0x79d   :  { %1958 = vmatmul.mubr.f32.vlgmr.msra.gmra.mrb[22].mxu1 %v3994_v19 }
 0x79e   :  { %3204 = vmatprep.mubr.msk.f32.mxu1 %vm4104_vm0, %v4105_v1  ;;  %3923 = vmatpush3.bf16.msra.mxu1 %v3922_v32  ;;  %v2040_v1 = vld [vmem:[%s4858_s5 + $0x20] sm:$0xff]  ;;  %s4070_s5 = scalar_lea.vmem %s2138_s10, 32 }
 0x79f   :  { %3924 = vmatprep.subr.bf16.mxu1 %v4103_v0  ;;  %v3928_v52 = vpack.c.bf16 %v2041_v51, %v2040_v1  ;;  %p4071_p10 = scmp.ne.s32.totalorder %s2138_s10, %s4070_s5  ;;  %p4076_p12 = scmp.lt.s32.totalorder %s4070_s5, %s4070_s5 }
 0x7a1   :  { %p4077_p13 = por %p4076_p12, %p4075_p11 }
 0x7a2   :  { %3926 = vmatpush3.bf16.msra.mxu1 %v3925_v43 }
 0x7a3   :  { %3927 = vmatprep.subr.bf16.mxu1 %v4103_v0  ;;  %p4078_p0 = pnand %p4077_p13, %p4071_p10 }
 0x7a6   :  { %3929 = vmatpush3.bf16.msra.mxu1 %v3928_v52 }
 0x7a7   :  { %3930 = vmatprep.subr.bf16.mxu1 %v4103_v0 }
 0x7aa   :  { %3932 = vmatpush3.bf16.msra.mxu1 %v3931_v14 }
 0x7ab   :  { %3933 = vmatprep.subr.bf16.mxu1 %v4103_v0 }
 0x7ae   :  { %3935 = vmatpush3.bf16.msra.mxu1 %v3934_v5 }
 0x7af   :  { %3936 = vmatprep.subr.bf16.mxu1 %v4103_v0 }
 0x7b2   :  { %3938 = vmatpush3.bf16.msra.mxu1 %v3937_v17 }
 0x7b3   :  { %3939 = vmatprep.subr.bf16.mxu1 %v4103_v0 }
 0x7b6   :  { %3941 = vmatpush3.bf16.msra.mxu1 %v3940_v27 }
 0x7b7   :  { %3942 = vmatprep.subr.bf16.mxu1 %v4103_v0 }
 0x7ba   :  { %3944 = vmatpush3.bf16.msra.mxu1 %v3943_v34 }
 0x850   :  { %v2791_v21 = vpop.f32.mrb[22].mxu0 }
 0x851   :  { %v2792_v26 = vpop.f32.mrb[23].mxu0 }
 0x852   :  { %v2793_v31 = vadd.f32 %v2792_v26, %v2791_v21 }
 0x854   :  { %v1890_v10 = vadd.f32 %v4003_v6, %v2793_v31 }
 0x870   :  { %v2826_v55 = vpop.f32.mrb[22].mxu1 }
 0x871   :  { %v2827_v56 = vpop.f32.mrb[23].mxu1 }
 0x872   :  { %v2828_v58 = vadd.f32 %v2827_v56, %v2826_v55 }
 0x874   :  { %v1960_v11 = vadd.f32 %v2828_v58, %v4513_v59 }
 0x876   :  { %3997 = vtanh.f32 %v1960_v11 }
 0x877   :  { %3999 = vtanh.f32 %v1890_v10 }
 0x880   :  { %v3998_v12 = vpop.eup %3997 }
 0x881   :  { %v4000_v22 = vpop.eup %3999  ;;  %2029 = vmatprep.mubr.f32.mxu0 %v3998_v12 }
 0x882   :  { %2030 = vmatmul.mubr.f32.vlgmr.msra.gmra.mrb[24].mxu0 %v4000_v22 }
 0x955   :  { %v2861_v37 = vpop.f32.mrb[24].mxu0 }
 0x956   :  { %v2862_v38 = vpop.f32.mrb[25].mxu0 }
 0x957   :  { %v2863_v44 = vadd.f32 %v2862_v38, %v2861_v37 }
 0x959   :  { %v2032_v45 = vadd.f32 %v2863_v44, %v4513_v59 }
 0x95b   :  { %4001 = vtanh.f32 %v2032_v45 }
 0x965   :  { %v4002_v46 = vpop.eup %4001 }
 0x966   :  { %3205 = vmatmul.mubr.f32.vlgmr.msra.gmra.mrb[24].mxu1 %v4002_v46 }
 0xa39   :  { %v2125_v36 = vpop.f32.mrb[24].mxu1 }
 0xa3a   :  { %v2126_v41 = vadd.f32 %v2161_v50, %v2125_v36  ;;  %v3206_v42 = vpop.f32.mrb[25].mxu1 }
 0xa3c   :  { %2130 = vst.msk [vmem:[#allocation8] sm:$0x3] %vm2129_vm5, %v2126_v41 }
 0xa3d   :  { %4081 = shalt.err (!%p4078_p0)
}
 0xa3e   :  { %s4082_s15 = scalar_lea.hbm %s4860_s7, 32 }
 0xa3f   :  { %p4083_p1 = scmp.ne.s32.totalorder %s4860_s7, %s4082_s15  ;;  %p4086_p2 = scmp.lt.u32.totalorder %s4082_s15, %s4860_s7 }
 0xa41   :  { %p4088_p3 = pnand %p4086_p2, %p4083_p1 }
 0xa43   :  { %4091 = shalt.err (!%p4088_p3)
}
 0xa44   :  { %2140 = dma.vmem_to_hbm [thread:$0]  %s2138_s10, 32, %s4860_s7, [#allocation4]  }
 0xa45   :  { %4096 = dma.done.wait [#allocation4], 32  }
 0xa46   :  { %4097 = vsyncadd [#allocation4], 4294967264 }
 0xa47   :  { %2144 = vsyncpa [#allocation3], 1 }
 0xa48   :  { %2145 = vsyncpa [#allocation6], 1 }
 0xa49   :  { %2146 = vsyncpa [#allocation4], 1 }

</bundles_post_ra>
